<compile_context>
chip_gen: v7x
topology: tpu7x:2x2x1
jax: 0.10.0
libtpu: 0.0.40
codegen_flags: <defaults>
</compile_context>

<pallas_src>
import functools

import numpy as np

import jax
import jax.numpy as jnp
from jax.experimental import pallas as pl
from jax.experimental.pallas import tpu as pltpu


def _round_up(a, m):
    return ((a + m - 1) // m) * m


def _avg_kernel(tile_start_ref, ntiles_ref, ids_ref, x_ref, inv_ref, o_ref,
                acc_ref, *, gb):
    """Mean pooling for one block of `gb` graphs, accumulated over node tiles."""
    g = pl.program_id(0)          # graph-block index
    t = pl.program_id(1)          # node-tile index within this graph block

    @pl.when(t == 0)
    def _init():
        acc_ref[...] = jnp.zeros_like(acc_ref)

    @pl.when(t < ntiles_ref[g])   # idle steps: DMA already elided, skip compute
    def _accumulate():
        ids = ids_ref[...]                                   # (1, tn) int32, lane-major
        gids = g * gb + jax.lax.broadcasted_iota(jnp.int32, (gb, 1), 0)
        # One-hot built directly in x.dtype: bf16 x bf16 -> f32 is MXU-native.
        onehot = (gids == ids).astype(x_ref.dtype)           # (gb, tn)
        acc_ref[...] += jnp.dot(onehot, x_ref[...],
                                preferred_element_type=jnp.float32)

    @pl.when(t == pl.num_programs(1) - 1)
    def _finalize():
        # Exact host-computed 1/count (0 for empty graphs) -> single multiply.
        o_ref[...] = (acc_ref[...] * inv_ref[...]).astype(o_ref.dtype)


def _max_kernel(tile_start_ref, ntiles_ref, off_ref, x_ref, o_ref,
                acc_ref, *, gb, tn):
    """Max pooling for one block of `gb` graphs, accumulated over node tiles."""
    g = pl.program_id(0)
    t = pl.program_id(1)

    @pl.when(t == 0)
    def _init():
        acc_ref[...] = jnp.full_like(acc_ref, -jnp.inf)

    @pl.when(t < ntiles_ref[g])
    def _accumulate():
        x = x_ref[...]                                       # native dtype (no upcast)
        row0 = (tile_start_ref[g] + t) * tn                  # global row of this tile
        rows = row0 + jax.lax.broadcasted_iota(jnp.int32, (tn, 1), 0)
        neg = jnp.asarray(-jnp.inf, dtype=x.dtype)
        for j in range(gb):                                  # static unroll over block
            gid = g * gb + j
            lo = off_ref[gid]                                # SMEM scalar reads
            hi = off_ref[gid + 1]
            # Only do the full-tile masked max if graph `gid` owns rows in this
            # tile (sorted batch => typically 1-3 graphs per tile, not gb).
            present = jnp.maximum(lo, row0) < jnp.minimum(hi, row0 + tn)

            @pl.when(present)
            def _do(j=j, lo=lo, hi=hi):
                mask = jnp.logical_and(rows >= lo, rows < hi)            # (tn, 1)
                red = jnp.max(jnp.where(mask, x, neg), axis=0, keepdims=True)
                acc_ref[j:j + 1, :] = jnp.maximum(acc_ref[j:j + 1, :],
                                                  red.astype(jnp.float32))

    @pl.when(t == pl.num_programs(1) - 1)
    def _finalize():
        # Empty graphs stay -inf (same as jax.ops.segment_max); padded rows /
        # padded feature columns are sliced off by the wrapper.
        o_ref[...] = acc_ref[...].astype(o_ref.dtype)


def global_graph_pooling(x, batch, num_graphs, aggr, *, tn=None, gb=None):
    """Pooled node features per graph, [num_graphs, F].

    Assumes the torch_geometric convention: `batch` is sorted and contains
    graph ids in [0, num_graphs).  `x` must be a floating dtype.
    """
    if aggr not in ("max", "avg"):
        raise RuntimeError("Invalid aggration method in Global Graph Pooling Layer")

    N, F = x.shape
    batch_np = np.asarray(jax.device_get(batch)).astype(np.int64)
    itemsize = np.dtype(x.dtype).itemsize

    # --- feature padding: lane-dense accumulator / output stores.
    Fp = _round_up(F, 128)

    # --- graphs per output block: big for 'avg' (MXU rows, fewer block
    #     boundaries), small for 'max' (VPU work scales with gb).  Keep ngb >= 2
    #     where possible so the "parallel" axis can split across v7x's 2 TCs.
    if gb is None:
        if aggr == "max":
            gb = 8
        else:
            gb = int(min(128, max(8, 8 * ((num_graphs + 15) // 16))))

    # --- node-tile size: multiple of 128, grown toward ~2 MiB per x buffer
    #     (double-buffered this stays well inside v7x's 32 MiB scoped VMEM and
    #     is comfortably under v5e/v6e limits), capped by the padded node count.
    if tn is None:
        budget = 2 * 1024 * 1024
        tn = (budget // (Fp * itemsize)) // 128 * 128
        tn = int(max(128, min(tn, 4096, _round_up(N, 128))))
    else:
        tn = int(max(128, _round_up(tn, 128)))

    n_pad = _round_up(N, tn)
    b_pad = _round_up(num_graphs, gb)
    ngb = b_pad // gb

    x_p = x
    if Fp != F:
        x_p = jnp.pad(x_p, ((0, 0), (0, Fp - F)))
    if n_pad != N:
        x_p = jnp.pad(x_p, ((0, n_pad - N), (0, 0)))

    # --- sorted-batch schedule (scalar prefetch): which node tiles each block
    #     of `gb` consecutive graphs touches.  Each node tile is visited ~once.
    sizes = np.bincount(batch_np, minlength=num_graphs).astype(np.int64)
    off = np.zeros(num_graphs + 1, np.int64)
    off[1:] = np.cumsum(sizes)
    tile_start = np.zeros((ngb,), np.int32)
    ntiles = np.zeros((ngb,), np.int32)
    for g in range(ngb):
        lo = off[min(g * gb, num_graphs)]
        hi = off[min((g + 1) * gb, num_graphs)]
        if hi > lo:
            t0 = lo // tn
            t1 = (hi - 1) // tn
            tile_start[g] = t0
            ntiles[g] = t1 - t0 + 1
    max_tiles = int(max(1, ntiles.max()))

    # Idle-step-friendly clamp: once t >= ntiles[g] the block index repeats the
    # block's own last tile, so Pallas skips the (unused) DMA entirely.
    def _tile(g, t, ts, nt):
        return ts[g] + jnp.minimum(t, jnp.maximum(nt[g], 1) - 1)

    compiler_params = pltpu.CompilerParams(
        dimension_semantics=("parallel", "arbitrary"),
        vmem_limit_bytes=32 * 1024 * 1024)

    if aggr == "avg":
        # Lane-major id stream (tiny vs the x tile) + exact host 1/count.
        ids_np = np.full((n_pad,), -1, np.int32)
        ids_np[:N] = batch_np
        ids = jnp.asarray(ids_np).reshape(1, n_pad)
        inv_np = np.zeros((b_pad, 1), np.float32)
        inv_np[:num_graphs, 0] = np.where(
            sizes > 0, 1.0 / np.maximum(sizes, 1), 0.0).astype(np.float32)
        inv = jnp.asarray(inv_np)

        def x_map(g, t, ts, nt):
            return (_tile(g, t, ts, nt), 0)

        def ids_map(g, t, ts, nt):
            return (0, _tile(g, t, ts, nt))

        def inv_map(g, t, ts, nt):
            return (g, 0)

        def out_map(g, t, ts, nt):
            return (g, 0)

        out = pl.pallas_call(
            functools.partial(_avg_kernel, gb=gb),
            out_shape=jax.ShapeDtypeStruct((b_pad, Fp), x.dtype),
            grid_spec=pltpu.PrefetchScalarGridSpec(
                num_scalar_prefetch=2,
                grid=(ngb, max_tiles),
                in_specs=[pl.BlockSpec((1, tn), ids_map),
                          pl.BlockSpec((tn, Fp), x_map),
                          pl.BlockSpec((gb, 1), inv_map)],
                out_specs=pl.BlockSpec((gb, Fp), out_map),
                scratch_shapes=[pltpu.VMEM((gb, Fp), jnp.float32)]),
            compiler_params=compiler_params,
        )(jnp.asarray(tile_start), jnp.asarray(ntiles), ids, x_p, inv)
    else:
        # 'max': no ids stream at all — per-graph row ranges from SMEM offsets.
        off_full = np.full((b_pad + 1,), N, np.int32)
        off_full[:num_graphs + 1] = off.astype(np.int32)

        def x_map(g, t, ts, nt, offp):
            return (_tile(g, t, ts, nt), 0)

        def out_map(g, t, ts, nt, offp):
            return (g, 0)

        out = pl.pallas_call(
            functools.partial(_max_kernel, gb=gb, tn=tn),
            out_shape=jax.ShapeDtypeStruct((b_pad, Fp), x.dtype),
            grid_spec=pltpu.PrefetchScalarGridSpec(
                num_scalar_prefetch=3,
                grid=(ngb, max_tiles),
                in_specs=[pl.BlockSpec((tn, Fp), x_map)],
                out_specs=pl.BlockSpec((gb, Fp), out_map),
                scratch_shapes=[pltpu.VMEM((gb, Fp), jnp.float32)]),
            compiler_params=compiler_params,
        )(jnp.asarray(tile_start), jnp.asarray(ntiles), jnp.asarray(off_full), x_p)

    return out[:num_graphs, :F]


def _reference(x, batch, num_graphs, aggr):
    """Pure-JAX reference (segment max / mean)."""
    if aggr == "max":
        return jax.ops.segment_max(x, batch, num_segments=num_graphs)
    s = jax.ops.segment_sum(x, batch, num_segments=num_graphs)
    cnt = jax.ops.segment_sum(jnp.ones((x.shape[0],), jnp.float32), batch,
                              num_segments=num_graphs)
    return s / jnp.maximum(cnt, 1.0)[:, None]


if __name__ == "__main__":
    key = jax.random.PRNGKey(0)

    # 10 graphs, 300 nodes, 128 features; sorted batch vector (PyG convention).
    sizes = [40, 75, 3, 60, 22, 31, 8, 25, 20, 16]
    B = len(sizes)
    N, F = sum(sizes), 128
    x = jax.random.normal(key, (N, F), dtype=jnp.float32)
    batch = jnp.asarray(np.repeat(np.arange(B, dtype=np.int32), sizes))

    ok = True
    for aggr in ("max", "avg"):
        ref = _reference(x, batch, B, aggr)
        for tn in (128, None):   # tn=128 exercises multi-tile accumulation;
            out = jax.block_until_ready(      # tn=None exercises auto-sizing.
                global_graph_pooling(x, batch, B, aggr, tn=tn))
            assert out.shape == (B, F)
            ok = ok and bool(jnp.allclose(out, ref, atol=1e-4, rtol=1e-4))

    print("KERNEL_OK" if ok else "KERNEL_MISMATCH")
</pallas_src>

<mosaic_0001>
module attributes {stable_mosaic.version = 11 : i64} {
  func.func @_max_kernel(%arg0: i32, %arg1: i32, %arg2: memref<2xi32, #tpu.memory_space<smem>>, %arg3: memref<2xi32, #tpu.memory_space<smem>>, %arg4: memref<17xi32, #tpu.memory_space<smem>>, %arg5: memref<128x128xf32, #tpu.memory_space<vmem>>, %arg6: memref<8x128xf32, #tpu.memory_space<vmem>>, %arg7: memref<8x128xf32, #tpu.memory_space<vmem>>) attributes {dimension_semantics = [#tpu.dimension_semantics<parallel>, #tpu.dimension_semantics<arbitrary>], iteration_bounds = array<i64: 2, 3>, scalar_prefetch = 3 : i64, scratch_operands = 1 : i64, tpu.core_type = #tpu.core_type<tc>, window_params = [{transform_indices = @transform_0, window_bounds = array<i64: 128, 128>}, {transform_indices = @transform_1, window_bounds = array<i64: 8, 128>}]} {
    %c0_i32 = arith.constant 0 : i32
    %0 = arith.cmpi eq, %arg1, %c0_i32 : i32
    %1 = arith.extui %0 : i1 to i32
    %c0_i32_0 = arith.constant 0 : i32
    %2 = arith.cmpi ne, %1, %c0_i32_0 : i32
    scf.if %2 {
      %cst = arith.constant 0xFF800000 : f32
      %11 = vector.broadcast %cst : f32 to vector<8x128xf32>
      %c0 = arith.constant 0 : index
      %c0_3 = arith.constant 0 : index
      %12 = vector.load %arg7[%c0, %c0_3] : memref<8x128xf32, #tpu.memory_space<vmem>>, vector<8x128xf32>
      tpu.vector_store %arg7[%c0, %c0_3], %11 {strides = array<i32>} : memref<8x128xf32, #tpu.memory_space<vmem>>, vector<8x128xf32>,
    } else {
    }
    %3 = arith.index_cast %arg0 : i32 to index
    %4 = memref.load %arg3[%3] : memref<2xi32, #tpu.memory_space<smem>>
    %5 = arith.cmpi slt, %arg1, %4 : i32
    %6 = arith.extui %5 : i1 to i32
    %c0_i32_1 = arith.constant 0 : i32
    %7 = arith.cmpi ne, %6, %c0_i32_1 : i32
    scf.if %7 {
      %c0 = arith.constant 0 : index
      %c0_3 = arith.constant 0 : index
      %11 = vector.load %arg5[%c0, %c0_3] : memref<128x128xf32, #tpu.memory_space<vmem>>, vector<128x128xf32>
      %12 = arith.index_cast %arg0 : i32 to index
      %13 = memref.load %arg2[%12] : memref<2xi32, #tpu.memory_space<smem>>
      %14 = arith.addi %13, %arg1 : i32
      %c128_i32 = arith.constant 128 : i32
      %15 = arith.muli %14, %c128_i32 : i32
      %16 = tpu.iota {dimensions = array<i32: 0>} : vector<128x1xi32>
      %17 = vector.broadcast %15 : i32 to vector<128x1xi32>
      %18 = arith.addi %17, %16 : vector<128x1xi32>
      %c8_i32 = arith.constant 8 : i32
      %19 = arith.muli %arg0, %c8_i32 : i32
      %c0_i32_4 = arith.constant 0 : i32
      %20 = arith.addi %19, %c0_i32_4 : i32
      %21 = arith.index_cast %20 : i32 to index
      %22 = memref.load %arg4[%21] : memref<17xi32, #tpu.memory_space<smem>>
      %c1_i32 = arith.constant 1 : i32
      %23 = arith.addi %20, %c1_i32 : i32
      %24 = arith.index_cast %23 : i32 to index
      %25 = memref.load %arg4[%24] : memref<17xi32, #tpu.memory_space<smem>>
      %26 = arith.maxsi %22, %15 : i32
      %c128_i32_5 = arith.constant 128 : i32
      %27 = arith.addi %15, %c128_i32_5 : i32
      %28 = arith.minsi %25, %27 : i32
      %29 = arith.cmpi slt, %26, %28 : i32
      %30 = arith.extui %29 : i1 to i32
      %cst = arith.constant 0xFF800000 : f32
      %c0_i32_6 = arith.constant 0 : i32
      %31 = arith.cmpi ne, %30, %c0_i32_6 : i32
      scf.if %31 {
        %123 = vector.broadcast %22 : i32 to vector<128x1xi32>
        %124 = arith.cmpi sge, %18, %123 : vector<128x1xi32>
        %125 = vector.broadcast %25 : i32 to vector<128x1xi32>
        %126 = arith.cmpi slt, %18, %125 : vector<128x1xi32>
        %127 = arith.andi %124, %126 : vector<128x1xi1>
        %128 = vector.shape_cast %127 : vector<128x1xi1> to vector<128x1xi1>
        %129 = vector.broadcast %128 : vector<128x1xi1> to vector<128x128xi1>
        %130 = vector.broadcast %cst : f32 to vector<128x128xf32>
        %131 = arith.select %129, %11, %130 : vector<128x128xi1>, vector<128x128xf32>
        %cst_44 = arith.constant dense<0xFF800000> : vector<128xf32>
        %132 = vector.multi_reduction <maximumf>, %131, %cst_44 [0] : vector<128x128xf32> to vector<128xf32>
        %133 = vector.shape_cast %132 : vector<128xf32> to vector<1x128xf32>
        %c0_45 = arith.constant 0 : index
        %c0_46 = arith.constant 0 : index
        %134 = vector.load %arg7[%c0_45, %c0_46] : memref<8x128xf32, #tpu.memory_space<vmem>>, vector<1x128xf32>
        %135 = arith.maximumf %134, %133 : vector<1x128xf32>
        %c0_47 = arith.constant 0 : index
        %c0_48 = arith.constant 0 : index
        %136 = vector.load %arg7[%c0_47, %c0_48] : memref<8x128xf32, #tpu.memory_space<vmem>>, vector<1x128xf32>
        tpu.vector_store %arg7[%c0_47, %c0_48], %135 {strides = array<i32>} : memref<8x128xf32, #tpu.memory_space<vmem>>, vector<1x128xf32>,
      } else {
      }
      %c8_i32_7 = arith.constant 8 : i32
      %32 = arith.muli %arg0, %c8_i32_7 : i32
      %c1_i32_8 = arith.constant 1 : i32
      %33 = arith.addi %32, %c1_i32_8 : i32
      %34 = arith.index_cast %33 : i32 to index
      %35 = memref.load %arg4[%34] : memref<17xi32, #tpu.memory_space<smem>>
      %c1_i32_9 = arith.constant 1 : i32
      %36 = arith.addi %33, %c1_i32_9 : i32
      %37 = arith.index_cast %36 : i32 to index
      %38 = memref.load %arg4[%37] : memref<17xi32, #tpu.memory_space<smem>>
      %39 = arith.maxsi %35, %15 : i32
      %c128_i32_10 = arith.constant 128 : i32
      %40 = arith.addi %15, %c128_i32_10 : i32
      %41 = arith.minsi %38, %40 : i32
      %42 = arith.cmpi slt, %39, %41 : i32
      %43 = arith.extui %42 : i1 to i32
      %cst_11 = arith.constant 0xFF800000 : f32
      %c0_i32_12 = arith.constant 0 : i32
      %44 = arith.cmpi ne, %43, %c0_i32_12 : i32
      scf.if %44 {
        %123 = vector.broadcast %35 : i32 to vector<128x1xi32>
        %124 = arith.cmpi sge, %18, %123 : vector<128x1xi32>
        %125 = vector.broadcast %38 : i32 to vector<128x1xi32>
        %126 = arith.cmpi slt, %18, %125 : vector<128x1xi32>
        %127 = arith.andi %124, %126 : vector<128x1xi1>
        %128 = vector.shape_cast %127 : vector<128x1xi1> to vector<128x1xi1>
        %129 = vector.broadcast %128 : vector<128x1xi1> to vector<128x128xi1>
        %130 = vector.broadcast %cst_11 : f32 to vector<128x128xf32>
        %131 = arith.select %129, %11, %130 : vector<128x128xi1>, vector<128x128xf32>
        %cst_44 = arith.constant dense<0xFF800000> : vector<128xf32>
        %132 = vector.multi_reduction <maximumf>, %131, %cst_44 [0] : vector<128x128xf32> to vector<128xf32>
        %133 = vector.shape_cast %132 : vector<128xf32> to vector<1x128xf32>
        %c1 = arith.constant 1 : index
        %c0_45 = arith.constant 0 : index
        %134 = vector.load %arg7[%c1, %c0_45] : memref<8x128xf32, #tpu.memory_space<vmem>>, vector<1x128xf32>
        %135 = arith.maximumf %134, %133 : vector<1x128xf32>
        %c1_46 = arith.constant 1 : index
        %c0_47 = arith.constant 0 : index
        %136 = vector.load %arg7[%c1_46, %c0_47] : memref<8x128xf32, #tpu.memory_space<vmem>>, vector<1x128xf32>
        tpu.vector_store %arg7[%c1_46, %c0_47], %135 {strides = array<i32>} : memref<8x128xf32, #tpu.memory_space<vmem>>, vector<1x128xf32>,
      } else {
      }
      %c8_i32_13 = arith.constant 8 : i32
      %45 = arith.muli %arg0, %c8_i32_13 : i32
      %c2_i32_14 = arith.constant 2 : i32
      %46 = arith.addi %45, %c2_i32_14 : i32
      %47 = arith.index_cast %46 : i32 to index
      %48 = memref.load %arg4[%47] : memref<17xi32, #tpu.memory_space<smem>>
      %c1_i32_15 = arith.constant 1 : i32
      %49 = arith.addi %46, %c1_i32_15 : i32
      %50 = arith.index_cast %49 : i32 to index
      %51 = memref.load %arg4[%50] : memref<17xi32, #tpu.memory_space<smem>>
      %52 = arith.maxsi %48, %15 : i32
      %c128_i32_16 = arith.constant 128 : i32
      %53 = arith.addi %15, %c128_i32_16 : i32
      %54 = arith.minsi %51, %53 : i32
      %55 = arith.cmpi slt, %52, %54 : i32
      %56 = arith.extui %55 : i1 to i32
      %cst_17 = arith.constant 0xFF800000 : f32
      %c0_i32_18 = arith.constant 0 : i32
      %57 = arith.cmpi ne, %56, %c0_i32_18 : i32
      scf.if %57 {
        %123 = vector.broadcast %48 : i32 to vector<128x1xi32>
        %124 = arith.cmpi sge, %18, %123 : vector<128x1xi32>
        %125 = vector.broadcast %51 : i32 to vector<128x1xi32>
        %126 = arith.cmpi slt, %18, %125 : vector<128x1xi32>
        %127 = arith.andi %124, %126 : vector<128x1xi1>
        %128 = vector.shape_cast %127 : vector<128x1xi1> to vector<128x1xi1>
        %129 = vector.broadcast %128 : vector<128x1xi1> to vector<128x128xi1>
        %130 = vector.broadcast %cst_17 : f32 to vector<128x128xf32>
        %131 = arith.select %129, %11, %130 : vector<128x128xi1>, vector<128x128xf32>
        %cst_44 = arith.constant dense<0xFF800000> : vector<128xf32>
        %132 = vector.multi_reduction <maximumf>, %131, %cst_44 [0] : vector<128x128xf32> to vector<128xf32>
        %133 = vector.shape_cast %132 : vector<128xf32> to vector<1x128xf32>
        %c2 = arith.constant 2 : index
        %c0_45 = arith.constant 0 : index
        %134 = vector.load %arg7[%c2, %c0_45] : memref<8x128xf32, #tpu.memory_space<vmem>>, vector<1x128xf32>
        %135 = arith.maximumf %134, %133 : vector<1x128xf32>
        %c2_46 = arith.constant 2 : index
        %c0_47 = arith.constant 0 : index
        %136 = vector.load %arg7[%c2_46, %c0_47] : memref<8x128xf32, #tpu.memory_space<vmem>>, vector<1x128xf32>
        tpu.vector_store %arg7[%c2_46, %c0_47], %135 {strides = array<i32>} : memref<8x128xf32, #tpu.memory_space<vmem>>, vector<1x128xf32>,
      } else {
      }
      %c8_i32_19 = arith.constant 8 : i32
      %58 = arith.muli %arg0, %c8_i32_19 : i32
      %c3_i32 = arith.constant 3 : i32
      %59 = arith.addi %58, %c3_i32 : i32
      %60 = arith.index_cast %59 : i32 to index
      %61 = memref.load %arg4[%60] : memref<17xi32, #tpu.memory_space<smem>>
      %c1_i32_20 = arith.constant 1 : i32
      %62 = arith.addi %59, %c1_i32_20 : i32
      %63 = arith.index_cast %62 : i32 to index
      %64 = memref.load %arg4[%63] : memref<17xi32, #tpu.memory_space<smem>>
      %65 = arith.maxsi %61, %15 : i32
      %c128_i32_21 = arith.constant 128 : i32
      %66 = arith.addi %15, %c128_i32_21 : i32
      %67 = arith.minsi %64, %66 : i32
      %68 = arith.cmpi slt, %65, %67 : i32
      %69 = arith.extui %68 : i1 to i32
      %cst_22 = arith.constant 0xFF800000 : f32
      %c0_i32_23 = arith.constant 0 : i32
      %70 = arith.cmpi ne, %69, %c0_i32_23 : i32
      scf.if %70 {
        %123 = vector.broadcast %61 : i32 to vector<128x1xi32>
        %124 = arith.cmpi sge, %18, %123 : vector<128x1xi32>
        %125 = vector.broadcast %64 : i32 to vector<128x1xi32>
        %126 = arith.cmpi slt, %18, %125 : vector<128x1xi32>
        %127 = arith.andi %124, %126 : vector<128x1xi1>
        %128 = vector.shape_cast %127 : vector<128x1xi1> to vector<128x1xi1>
        %129 = vector.broadcast %128 : vector<128x1xi1> to vector<128x128xi1>
        %130 = vector.broadcast %cst_22 : f32 to vector<128x128xf32>
        %131 = arith.select %129, %11, %130 : vector<128x128xi1>, vector<128x128xf32>
        %cst_44 = arith.constant dense<0xFF800000> : vector<128xf32>
        %132 = vector.multi_reduction <maximumf>, %131, %cst_44 [0] : vector<128x128xf32> to vector<128xf32>
        %133 = vector.shape_cast %132 : vector<128xf32> to vector<1x128xf32>
        %c3 = arith.constant 3 : index
        %c0_45 = arith.constant 0 : index
        %134 = vector.load %arg7[%c3, %c0_45] : memref<8x128xf32, #tpu.memory_space<vmem>>, vector<1x128xf32>
        %135 = arith.maximumf %134, %133 : vector<1x128xf32>
        %c3_46 = arith.constant 3 : index
        %c0_47 = arith.constant 0 : index
        %136 = vector.load %arg7[%c3_46, %c0_47] : memref<8x128xf32, #tpu.memory_space<vmem>>, vector<1x128xf32>
        tpu.vector_store %arg7[%c3_46, %c0_47], %135 {strides = array<i32>} : memref<8x128xf32, #tpu.memory_space<vmem>>, vector<1x128xf32>,
      } else {
      }
      %c8_i32_24 = arith.constant 8 : i32
      %71 = arith.muli %arg0, %c8_i32_24 : i32
      %c4_i32 = arith.constant 4 : i32
      %72 = arith.addi %71, %c4_i32 : i32
      %73 = arith.index_cast %72 : i32 to index
      %74 = memref.load %arg4[%73] : memref<17xi32, #tpu.memory_space<smem>>
      %c1_i32_25 = arith.constant 1 : i32
      %75 = arith.addi %72, %c1_i32_25 : i32
      %76 = arith.index_cast %75 : i32 to index
      %77 = memref.load %arg4[%76] : memref<17xi32, #tpu.memory_space<smem>>
      %78 = arith.maxsi %74, %15 : i32
      %c128_i32_26 = arith.constant 128 : i32
      %79 = arith.addi %15, %c128_i32_26 : i32
      %80 = arith.minsi %77, %79 : i32
      %81 = arith.cmpi slt, %78, %80 : i32
      %82 = arith.extui %81 : i1 to i32
      %cst_27 = arith.constant 0xFF800000 : f32
      %c0_i32_28 = arith.constant 0 : i32
      %83 = arith.cmpi ne, %82, %c0_i32_28 : i32
      scf.if %83 {
        %123 = vector.broadcast %74 : i32 to vector<128x1xi32>
        %124 = arith.cmpi sge, %18, %123 : vector<128x1xi32>
        %125 = vector.broadcast %77 : i32 to vector<128x1xi32>
        %126 = arith.cmpi slt, %18, %125 : vector<128x1xi32>
        %127 = arith.andi %124, %126 : vector<128x1xi1>
        %128 = vector.shape_cast %127 : vector<128x1xi1> to vector<128x1xi1>
        %129 = vector.broadcast %128 : vector<128x1xi1> to vector<128x128xi1>
        %130 = vector.broadcast %cst_27 : f32 to vector<128x128xf32>
        %131 = arith.select %129, %11, %130 : vector<128x128xi1>, vector<128x128xf32>
        %cst_44 = arith.constant dense<0xFF800000> : vector<128xf32>
        %132 = vector.multi_reduction <maximumf>, %131, %cst_44 [0] : vector<128x128xf32> to vector<128xf32>
        %133 = vector.shape_cast %132 : vector<128xf32> to vector<1x128xf32>
        %c4 = arith.constant 4 : index
        %c0_45 = arith.constant 0 : index
        %134 = vector.load %arg7[%c4, %c0_45] : memref<8x128xf32, #tpu.memory_space<vmem>>, vector<1x128xf32>
        %135 = arith.maximumf %134, %133 : vector<1x128xf32>
        %c4_46 = arith.constant 4 : index
        %c0_47 = arith.constant 0 : index
        %136 = vector.load %arg7[%c4_46, %c0_47] : memref<8x128xf32, #tpu.memory_space<vmem>>, vector<1x128xf32>
        tpu.vector_store %arg7[%c4_46, %c0_47], %135 {strides = array<i32>} : memref<8x128xf32, #tpu.memory_space<vmem>>, vector<1x128xf32>,
      } else {
      }
      %c8_i32_29 = arith.constant 8 : i32
      %84 = arith.muli %arg0, %c8_i32_29 : i32
      %c5_i32 = arith.constant 5 : i32
      %85 = arith.addi %84, %c5_i32 : i32
      %86 = arith.index_cast %85 : i32 to index
      %87 = memref.load %arg4[%86] : memref<17xi32, #tpu.memory_space<smem>>
      %c1_i32_30 = arith.constant 1 : i32
      %88 = arith.addi %85, %c1_i32_30 : i32
      %89 = arith.index_cast %88 : i32 to index
      %90 = memref.load %arg4[%89] : memref<17xi32, #tpu.memory_space<smem>>
      %91 = arith.maxsi %87, %15 : i32
      %c128_i32_31 = arith.constant 128 : i32
      %92 = arith.addi %15, %c128_i32_31 : i32
      %93 = arith.minsi %90, %92 : i32
      %94 = arith.cmpi slt, %91, %93 : i32
      %95 = arith.extui %94 : i1 to i32
      %cst_32 = arith.constant 0xFF800000 : f32
      %c0_i32_33 = arith.constant 0 : i32
      %96 = arith.cmpi ne, %95, %c0_i32_33 : i32
      scf.if %96 {
        %123 = vector.broadcast %87 : i32 to vector<128x1xi32>
        %124 = arith.cmpi sge, %18, %123 : vector<128x1xi32>
        %125 = vector.broadcast %90 : i32 to vector<128x1xi32>
        %126 = arith.cmpi slt, %18, %125 : vector<128x1xi32>
        %127 = arith.andi %124, %126 : vector<128x1xi1>
        %128 = vector.shape_cast %127 : vector<128x1xi1> to vector<128x1xi1>
        %129 = vector.broadcast %128 : vector<128x1xi1> to vector<128x128xi1>
        %130 = vector.broadcast %cst_32 : f32 to vector<128x128xf32>
        %131 = arith.select %129, %11, %130 : vector<128x128xi1>, vector<128x128xf32>
        %cst_44 = arith.constant dense<0xFF800000> : vector<128xf32>
        %132 = vector.multi_reduction <maximumf>, %131, %cst_44 [0] : vector<128x128xf32> to vector<128xf32>
        %133 = vector.shape_cast %132 : vector<128xf32> to vector<1x128xf32>
        %c5 = arith.constant 5 : index
        %c0_45 = arith.constant 0 : index
        %134 = vector.load %arg7[%c5, %c0_45] : memref<8x128xf32, #tpu.memory_space<vmem>>, vector<1x128xf32>
        %135 = arith.maximumf %134, %133 : vector<1x128xf32>
        %c5_46 = arith.constant 5 : index
        %c0_47 = arith.constant 0 : index
        %136 = vector.load %arg7[%c5_46, %c0_47] : memref<8x128xf32, #tpu.memory_space<vmem>>, vector<1x128xf32>
        tpu.vector_store %arg7[%c5_46, %c0_47], %135 {strides = array<i32>} : memref<8x128xf32, #tpu.memory_space<vmem>>, vector<1x128xf32>,
      } else {
      }
      %c8_i32_34 = arith.constant 8 : i32
      %97 = arith.muli %arg0, %c8_i32_34 : i32
      %c6_i32 = arith.constant 6 : i32
      %98 = arith.addi %97, %c6_i32 : i32
      %99 = arith.index_cast %98 : i32 to index
      %100 = memref.load %arg4[%99] : memref<17xi32, #tpu.memory_space<smem>>
      %c1_i32_35 = arith.constant 1 : i32
      %101 = arith.addi %98, %c1_i32_35 : i32
      %102 = arith.index_cast %101 : i32 to index
      %103 = memref.load %arg4[%102] : memref<17xi32, #tpu.memory_space<smem>>
      %104 = arith.maxsi %100, %15 : i32
      %c128_i32_36 = arith.constant 128 : i32
      %105 = arith.addi %15, %c128_i32_36 : i32
      %106 = arith.minsi %103, %105 : i32
      %107 = arith.cmpi slt, %104, %106 : i32
      %108 = arith.extui %107 : i1 to i32
      %cst_37 = arith.constant 0xFF800000 : f32
      %c0_i32_38 = arith.constant 0 : i32
      %109 = arith.cmpi ne, %108, %c0_i32_38 : i32
      scf.if %109 {
        %123 = vector.broadcast %100 : i32 to vector<128x1xi32>
        %124 = arith.cmpi sge, %18, %123 : vector<128x1xi32>
        %125 = vector.broadcast %103 : i32 to vector<128x1xi32>
        %126 = arith.cmpi slt, %18, %125 : vector<128x1xi32>
        %127 = arith.andi %124, %126 : vector<128x1xi1>
        %128 = vector.shape_cast %127 : vector<128x1xi1> to vector<128x1xi1>
        %129 = vector.broadcast %128 : vector<128x1xi1> to vector<128x128xi1>
        %130 = vector.broadcast %cst_37 : f32 to vector<128x128xf32>
        %131 = arith.select %129, %11, %130 : vector<128x128xi1>, vector<128x128xf32>
        %cst_44 = arith.constant dense<0xFF800000> : vector<128xf32>
        %132 = vector.multi_reduction <maximumf>, %131, %cst_44 [0] : vector<128x128xf32> to vector<128xf32>
        %133 = vector.shape_cast %132 : vector<128xf32> to vector<1x128xf32>
        %c6 = arith.constant 6 : index
        %c0_45 = arith.constant 0 : index
        %134 = vector.load %arg7[%c6, %c0_45] : memref<8x128xf32, #tpu.memory_space<vmem>>, vector<1x128xf32>
        %135 = arith.maximumf %134, %133 : vector<1x128xf32>
        %c6_46 = arith.constant 6 : index
        %c0_47 = arith.constant 0 : index
        %136 = vector.load %arg7[%c6_46, %c0_47] : memref<8x128xf32, #tpu.memory_space<vmem>>, vector<1x128xf32>
        tpu.vector_store %arg7[%c6_46, %c0_47], %135 {strides = array<i32>} : memref<8x128xf32, #tpu.memory_space<vmem>>, vector<1x128xf32>,
      } else {
      }
      %c8_i32_39 = arith.constant 8 : i32
      %110 = arith.muli %arg0, %c8_i32_39 : i32
      %c7_i32 = arith.constant 7 : i32
      %111 = arith.addi %110, %c7_i32 : i32
      %112 = arith.index_cast %111 : i32 to index
      %113 = memref.load %arg4[%112] : memref<17xi32, #tpu.memory_space<smem>>
      %c1_i32_40 = arith.constant 1 : i32
      %114 = arith.addi %111, %c1_i32_40 : i32
      %115 = arith.index_cast %114 : i32 to index
      %116 = memref.load %arg4[%115] : memref<17xi32, #tpu.memory_space<smem>>
      %117 = arith.maxsi %113, %15 : i32
      %c128_i32_41 = arith.constant 128 : i32
      %118 = arith.addi %15, %c128_i32_41 : i32
      %119 = arith.minsi %116, %118 : i32
      %120 = arith.cmpi slt, %117, %119 : i32
      %121 = arith.extui %120 : i1 to i32
      %cst_42 = arith.constant 0xFF800000 : f32
      %c0_i32_43 = arith.constant 0 : i32
      %122 = arith.cmpi ne, %121, %c0_i32_43 : i32
      scf.if %122 {
        %123 = vector.broadcast %113 : i32 to vector<128x1xi32>
        %124 = arith.cmpi sge, %18, %123 : vector<128x1xi32>
        %125 = vector.broadcast %116 : i32 to vector<128x1xi32>
        %126 = arith.cmpi slt, %18, %125 : vector<128x1xi32>
        %127 = arith.andi %124, %126 : vector<128x1xi1>
        %128 = vector.shape_cast %127 : vector<128x1xi1> to vector<128x1xi1>
        %129 = vector.broadcast %128 : vector<128x1xi1> to vector<128x128xi1>
        %130 = vector.broadcast %cst_42 : f32 to vector<128x128xf32>
        %131 = arith.select %129, %11, %130 : vector<128x128xi1>, vector<128x128xf32>
        %cst_44 = arith.constant dense<0xFF800000> : vector<128xf32>
        %132 = vector.multi_reduction <maximumf>, %131, %cst_44 [0] : vector<128x128xf32> to vector<128xf32>
        %133 = vector.shape_cast %132 : vector<128xf32> to vector<1x128xf32>
        %c7 = arith.constant 7 : index
        %c0_45 = arith.constant 0 : index
        %134 = vector.load %arg7[%c7, %c0_45] : memref<8x128xf32, #tpu.memory_space<vmem>>, vector<1x128xf32>
        %135 = arith.maximumf %134, %133 : vector<1x128xf32>
        %c7_46 = arith.constant 7 : index
        %c0_47 = arith.constant 0 : index
        %136 = vector.load %arg7[%c7_46, %c0_47] : memref<8x128xf32, #tpu.memory_space<vmem>>, vector<1x128xf32>
        tpu.vector_store %arg7[%c7_46, %c0_47], %135 {strides = array<i32>} : memref<8x128xf32, #tpu.memory_space<vmem>>, vector<1x128xf32>,
      } else {
      }
    } else {
    }
    %c2_i32 = arith.constant 2 : i32
    %8 = arith.cmpi eq, %arg1, %c2_i32 : i32
    %9 = arith.extui %8 : i1 to i32
    %c0_i32_2 = arith.constant 0 : i32
    %10 = arith.cmpi ne, %9, %c0_i32_2 : i32
    scf.if %10 {
      %c0 = arith.constant 0 : index
      %c0_3 = arith.constant 0 : index
      %11 = vector.load %arg7[%c0, %c0_3] : memref<8x128xf32, #tpu.memory_space<vmem>>, vector<8x128xf32>
      %c0_4 = arith.constant 0 : index
      %c0_5 = arith.constant 0 : index
      %12 = vector.load %arg6[%c0_4, %c0_5] : memref<8x128xf32, #tpu.memory_space<vmem>>, vector<8x128xf32>
      tpu.vector_store %arg6[%c0_4, %c0_5], %11 {strides = array<i32>} : memref<8x128xf32, #tpu.memory_space<vmem>>, vector<8x128xf32>,
    } else {
    }
    return
  }
  func.func @transform_0(%arg0: i32, %arg1: i32, %arg2: memref<2xi32, #tpu.memory_space<smem>>, %arg3: memref<2xi32, #tpu.memory_space<smem>>, %arg4: memref<17xi32, #tpu.memory_space<smem>>) -> (i32, i32) {
    %0 = arith.index_cast %arg0 : i32 to index
    %1 = memref.load %arg2[%0] : memref<2xi32, #tpu.memory_space<smem>>
    %2 = arith.index_cast %arg0 : i32 to index
    %3 = memref.load %arg3[%2] : memref<2xi32, #tpu.memory_space<smem>>
    %c1_i32 = arith.constant 1 : i32
    %4 = arith.maxsi %3, %c1_i32 : i32
    %c1_i32_0 = arith.constant 1 : i32
    %5 = arith.subi %4, %c1_i32_0 : i32
    %6 = arith.minsi %arg1, %5 : i32
    %7 = arith.addi %1, %6 : i32
    %c0_i32 = arith.constant 0 : i32
    %c0_i32_1 = arith.constant 0 : i32
    return %7, %c0_i32 : i32, i32
  }
  func.func @transform_1(%arg0: i32, %arg1: i32, %arg2: memref<2xi32, #tpu.memory_space<smem>>, %arg3: memref<2xi32, #tpu.memory_space<smem>>, %arg4: memref<17xi32, #tpu.memory_space<smem>>) -> (i32, i32) {
    %c0_i32 = arith.constant 0 : i32
    %c0_i32_0 = arith.constant 0 : i32
    return %arg0, %c0_i32 : i32, i32
  }
}

</mosaic_0001>

<bundles_post_ra>
// kernel: tpu_custom_call.1
= control target key start
LH: loop header
LB: loop body
LE: loop exit
PB: predicated region body
PF: predicated region fallthrough
CT: control target
= control target key end

     0   :  { %s3440_s0 = inlined_call_operand.hbm [shape: s32[2], index: 0, kind: input, shape index: {}]   ;;  %s3441_s3 = inlined_call_operand.hbm [shape: f32[384,128], index: 3, kind: input, shape index: {}]   ;;  %s3442_s4 = inlined_call_operand.hbm [shape: f32[16,128], index: 4, kind: output, shape index: {}]   ;;  %s3443_s1 = inlined_call_operand.vmem [shape: s32[2], index: 1, kind: input, shape index: {}]   ;;  %s3444_s2 = inlined_call_operand.vmem [shape: s32[17], index: 2, kind: input, shape index: {}]  }
   0x1   :  { %s1573_s17 = scalar_lea.hbm %s3440_s0, 16 }
   0x2   :  { %p1574_p0 = scmp.ne.s32.totalorder %s3440_s0, %s1573_s17  ;;  %p1577_p1 = scmp.lt.u32.totalorder %s1573_s17, %s3440_s0 }
   0x4   :  { %p1579_p2 = pnand %p1577_p1, %p1574_p0 }
   0x6   :  { %1582 = shalt.err (!%p1579_p2)  }
   0x7   :  { %s1763_s22 = smov [#allocation4]   ;;  %s11_s27 = sshll.u32 %s3443_s1, 4  ;;  %s12_s27 = int_to_ptr.vmem [resolvable:$true] %s11_s27 }
   0x8   :  { %10 = dma.hbm_to_smem %s3440_s0, 16, %s1763_s22, [#allocation3] }
   0x9   :  { %s15_s30 = sshll.u32 %s3444_s2, 4  ;;  %s1583_s5 = scalar_lea.vmem %s12_s27, 16  ;;  %s16_s30 = int_to_ptr.vmem [resolvable:$true] %s15_s30 }
   0xa   :  { %p1584_p3 = scmp.ne.s32.totalorder %s12_s27, %s1583_s5  ;;  %p1588_p4 = scmp.lt.s32.totalorder %s12_s27, %s12_s27 }
   0xb   :  { %p1589_p5 = scmp.lt.s32.totalorder %s1583_s5, %s1583_s5 }
   0xd   :  { %p1590_p6 = por %p1589_p5, %p1588_p4 }
   0xf   :  { %p1591_p7 = pnand %p1590_p6, %p1584_p3 }
  0x11   :  { %1594 = shalt.err (!%p1591_p7)  }
  0x12   :  { %s1764_s6 = smov [#allocation5]   ;;  %s1595_s0 = scalar_lea.vmem %s16_s30, 16 }
  0x13   :  { %14 = dma.vmem_to_smem %s12_s27, 16, %s1764_s6, [#allocation3] }
  0x14   :  { %p1596_p8 = scmp.ne.s32.totalorder %s16_s30, %s1595_s0  ;;  %p1600_p9 = scmp.lt.s32.totalorder %s16_s30, %s16_s30 }
  0x15   :  { %p1601_p10 = scmp.lt.s32.totalorder %s1595_s0, %s1595_s0 }
  0x17   :  { %p1602_p11 = por %p1601_p10, %p1600_p9 }
  0x19   :  { %p1603_p12 = pnand %p1602_p11, %p1596_p8 }
  0x1b   :  { %1606 = shalt.err (!%p1603_p12)  }
  0x1c   :  { %s1765_s1 = smov [#allocation6]  }
  0x1d   :  { %18 = dma.vmem_to_smem %s16_s30, 16, %s1765_s1, [#allocation3] }
  0x1e   :  { %1709 = dma.done.wait [#allocation3], 48 }
  0x1f   :  { %1710 = vsyncadd [#allocation3], 4294967248 }
  0x20   :  { %20 = sfence }
  0x21   :  { %21 = vsyncpa [#allocation8], 0 }
  0x22   :  { %23 = vsyncpa [#allocation8 + $0x1], 0 }
  0x23   :  { %24 = vsyncpa [#allocation9], 0 }
  0x24   :  { %26 = vsyncpa [#allocation9 + $0x1], 0  ;;  %s1814_s2 = smov 0   ;;  %s1816_s7 = smov 0  }
  0x25   :  { %s1818_s8 = smov 0   ;;  %s1820_s9 = smov 0  }
  0x26   :  { %s1822_s10 = smov 0   ;;  %s1824_s11 = smov 0  }
  0x27   :  { %s1826_s12 = smov 0   ;;  %s1828_s13 = smov 0  }
  0x28   :  { %s1830_s14 = smov 0   ;;  %s1832_s15 = smov 0  }
  0x29   :  { %s1834_s16 = smov 0  }
  0x2a LB: > { %3451 = sst [smem:[#allocation18_spill]] %s1741_s11  ;;  %s41_s17 = sadd.s32 1, %s1753_s14  ;;  %s1761_s16 = sphi %s1834_s16, %s32_s16   ;;  %s1757_s15 = sphi %s1832_s15, %s3533_s15   ;;  %s1753_s14 = sphi %s1830_s14, %s3540_s14   ;;  %s1749_s13 = sphi %s1828_s13, %s3531_s13   ;;  %s1745_s12 = sphi %s1826_s12, %s3539_s12   ;;  %s1741_s11 = sphi %s1824_s11, %s3530_s11   ;;  %s1737_s10 = sphi %s1822_s10, %s3538_s10   ;;  %s1733_s9 = sphi %s1820_s9, %s3537_s9   ;;  %s1729_s8 = sphi %s1818_s8, %s3536_s8   ;;  %s1725_s7 = sphi %s1816_s7, %s3535_s7   ;;  %s1721_s2 = sphi %s1814_s2, %s3534_s2  }
  0x2b   : > { %3452 = sst [smem:[#allocation19_spill]] %s1757_s15  ;;  %p42_p13 = scmp.ge.s32.totalorder %s41_s17, 3 }
  0x2c   : > { %s44_s18 = sadd.s32 1, %s1757_s15  ;;  %s49_s19 = sld [smem:[#allocation5 + %s1757_s15]] }
  0x2d   : > { %s1426_s20 = sadd.s32 4294967295, %s1761_s16   ;;  %s1427_s21 = sadd.s32 4294967294, %s1761_s16  }
  0x2e   : > { %s3542_s18 = smov (!%p42_p13, %s44_s18), %s1757_s15  ;;  %s3544_s17 = smov (%p42_p13, %s41_s17), 0 }
  0x2f   : > { %3453 = sst [smem:[#allocation20_spill]] %s3544_s17  ;;  %p46_p0 = scmp.ge.s32.totalorder %s3542_s18, 2 }
  0x30   : > { %p80_p1 = scmp.ne.s32.totalorder %s1737_s10, %s1733_s9  ;;  %s1877_s22 = sld [smem:[#allocation4 + %s1757_s15]] }
  0x31   : > { %p81_p2 = scmp.eq.s32.totalorder %s1426_s20, 0  ;;  %s3546_s18 = smov (%p46_p0, %s3542_s18), 0 }
  0x32   : > { %3454 = sst [smem:[#allocation21_spill]] %s3546_s18  ;;  %p50_p3 = scmp.gt.s32.totalorder %s49_s19, 1 }
  0x33   : > { %p1881_p4 = por %p81_p2, %p80_p1  ;;  %s57_s24 = sld [smem:[#allocation5 + %s3546_s18]] }
  0x34   : > { %p74_p5 = scmp.ne.s32.totalorder %s1741_s11, %s1737_s10  ;;  %s3548_s19 = smov (!%p50_p3, %s49_s19), 1 }
  0x35   : > { %s3455_s23 = scalar_select %p1881_p4, 1, 0 }
  0x36   : > { %s90_s25 = ssub.s32 %s1757_s15, %s3546_s18  ;;  %s93_s26 = sadd.s32 1, %s1729_s8 }
  0x37   : > { %s1428_s27 = sadd.s32 4294967295, %s3548_s19  ;;  %p91_p6 = scmp.eq.s32.totalorder %s90_s25, 0 }
  0x38   : > { %p53_p7 = scmp.lt.s32.totalorder %s1753_s14, %s1428_s27  ;;  %p103_p8 = scmp.ne.s32.totalorder %s1729_s8, %s1725_s7 }
  0x39   : > { %s1895_s28 = scalar_select %p91_p6, %s1729_s8, %s93_s26  }
  0x3a   : > { %s54_s29 = scalar_select %p53_p7, %s1753_s14, %s1428_s27 }
  0x3b   : > { %p58_p9 = scmp.gt.s32.totalorder %s57_s24, 1  ;;  %p104_p10 = scmp.eq.s32.totalorder %s1426_s20, 5 }
  0x3c   : > { %s56_s30 = sld [smem:[#allocation4 + %s3546_s18]]  ;;  %p109_p11 = scmp.ne.s32.totalorder %s1725_s7, %s1721_s2 }
  0x3d   : > { %s3550_s24 = smov (!%p58_p9, %s57_s24), 1  ;;  %p1901_p12 = por %p104_p10, %p103_p8 }
  0x3e   : > { %p110_p13 = scmp.eq.s32.totalorder %s1427_s21, 5  ;;  %s1429_s6 = sadd.s32 4294967295, %s3550_s24 }
  0x3f   : > { %s3456_s5 = scalar_select %p1901_p12, 1, 0 }
  0x40   : > { %p61_p0 = scmp.lt.s32.totalorder %s3544_s17, %s1429_s6  ;;  %p1906_p1 = por %p110_p13, %p109_p11 }
  0x41   : > { %s55_s1 = sadd.s32 %s54_s29, %s1877_s22  ;;  %p75_p2 = scmp.eq.s32.totalorder %s1761_s16, 0 }
  0x42   : > { %s3457_s0 = scalar_select %p1906_p1, 1, 0 }
  0x43   : > { %s62_s9 = scalar_select %p61_p0, %s3544_s17, %s1429_s6 }
  0x44   : > { %s67_s20 = sadd.s32 1, %s1741_s11  ;;  %p1917_p3 = por %p75_p2, %p74_p5 }
  0x45   : > { %s63_s19 = sadd.s32 %s62_s9, %s56_s30  ;;  %p1477_p7 = scmp.lt.s32.totalorder %s1761_s16, 6 }
  0x46   : > { %s64_s25 = ssub.s32 %s55_s1, %s63_s19  ;;  %s130_s30 = sand.u32 1, %s1741_s11  }
  0x47   : > { %p65_p6 = scmp.eq.s32.totalorder %s64_s25, 0  ;;  %p1934_p5 = pnand %p1477_p7, %p1917_p3 }
  0x48   : > { %s1458_s22 = scalar_select %p1917_p3, %s1757_s15, 0 }
  0x49   : > { %s1923_s21 = scalar_select %p65_p6, %s1741_s11, %s67_s20  }
  0x4a   : > { %s1457_s24 = scalar_select %p1917_p3, [#allocation4], [#allocation11] }
  0x4b   : > { %3459 = sst [smem:[#allocation22_spill]] %s1923_s21  ;;  %s3552_s22 = smov (!%p1477_p7, %s1458_s22), 0 }
  0x4c   : > { %s1459_s27 = scalar_select %p1917_p3, [#allocation5], [#allocation12] }
  0x4d   : > { %p1436_p8 = scmp.ge.s32.totalorder %s1761_s16, 1  ;;  %p157_p9 = scmp.lt.s32.totalorder %s1761_s16, 7 }
  0x4e   : > { %s3554_s27 = smov (!%p1477_p7, %s1459_s27), [#allocation14]  ;;  %s3556_s24 = smov (!%p1477_p7, %s1457_s24), [#allocation13] }
  0x4f   : > { %s136_s6 = sld [smem:[%s3554_s27 + %s3552_s22]]  ;;  %p1941_p10 = pnand %p1436_p8, %p157_p9 }
  0x50   : > { %s1432_s9 = sshll.u32 %s130_s30, 7  ;;  %s135_s19 = sld [smem:[%s3556_s24 + %s3552_s22]] }
  0x51   : > { %s134_s25 = scalar_lea.vmem [#allocation7], %s1432_s9  ;;  %s1954_s22 = scalar_lea.sflag [#allocation8], %s130_s30 }
  0x52   : > { %s149_s26 = sshll.u32 %s134_s25, 4  ;;  %p1609_p2 = pneg %p1934_p5  ;;  %s1947_s26 = int_to_ptr.vmem [resolvable:$true] %s149_s26 }
  0x53   : > { %s1612_s15 = scalar_lea.hbm %s3441_s3, 6144 }
  0x55   : > { %p137_p11 = scmp.gt.s32.totalorder %s136_s6, 1 }
  0x57   : > { %s3558_s6 = smov (!%p137_p11, %s136_s6), 1 }
  0x58   : > { %s1433_s20 = sadd.s32 4294967295, %s3558_s6 }
  0x59   : > { %p140_p13 = scmp.lt.s32.totalorder %s1753_s14, %s1433_s20 }
  0x5b   : > { %s141_s18 = scalar_select %p140_p13, %s1753_s14, %s1433_s20 }
  0x5d   : > { %s142_s27 = sadd.s32 %s141_s18, %s135_s19 }
  0x5e   : > { %s1456_s17 = sshll.u32 %s142_s27, 11 }
  0x5f   : > { %s1952_s11 = scalar_lea.hbm %s3441_s3, %s1456_s17 }
  0x60   : > { %s1607_s24 = scalar_lea.hbm %s1952_s11, 2048  ;;  %p1613_p7 = scmp.lt.u32.totalorder %s1952_s11, %s3441_s3 }
  0x61   : > { %p1608_p0 = scmp.ne.s32.totalorder %s1952_s11, %s1607_s24  ;;  %p1614_p8 = scmp.lt.u32.totalorder %s1612_s15, %s1607_s24 }
  0x62   : > { %p1616_p11 = scmp.lt.u32.totalorder %s1607_s24, %s1952_s11 }
  0x63   : > { %p1610_p3 = pnand %p1609_p2, %p1608_p0  ;;  %p1615_p9 = por %p1614_p8, %p1613_p7 }
  0x65   : > { %p1611_p6 = pneg %p1610_p3  ;;  %p1617_p13 = por %p1616_p11, %p1615_p9 }
  0x67   : > { %p1618_p1 = pnand %p1617_p13, %p1611_p6 }
  0x69   : > { %1621 = shalt.err (!%p1618_p1)
}
  0x6a   : > { %s1622_s30 = scalar_lea.vmem %s1947_s26, 2048  ;;  %s1766_s9 = smov [#allocation7]  }
  0x6b   : > { %p1623_p0 = scmp.ne.s32.totalorder %s1947_s26, %s1622_s30  ;;  %s1627_s19 = sshll.u32 %s1766_s9, 4  ;;  %s1628_s19 = int_to_ptr.vmem [resolvable:$false] %s1627_s19 }
  0x6c   : > { %s1629_s20 = scalar_lea.vmem %s1628_s19, 4096  ;;  %p1630_p4 = scmp.lt.s32.totalorder %s1947_s26, %s1628_s19 }
  0x6d   : > { %p1625_p3 = pnand %p1623_p0, %p1609_p2  ;;  %p1631_p7 = scmp.lt.s32.totalorder %s1629_s20, %s1622_s30 }
  0x6f   : > { %p1626_p12 = pneg %p1625_p3  ;;  %p1632_p8 = por %p1631_p7, %p1630_p4 }
  0x71   : > { %p1633_p9 = pnand %p1632_p8, %p1626_p12 }
  0x73   : > { %1636 = shalt.err (!%p1633_p9)
}
  0x74   : > { %s1767_s25 = smov 128   ;;  %s1768_s27 = smov 8  }
  0x75   : > { %1472 = dma.hbm_to_vmem [thread:$0]  (!%p1934_p5), %s1952_s11, 2048, %s1947_s26, %s1954_s22, %s1767_s25, %s1767_s25, %s1768_s27  }
  0x76   : > { %161 = sbr.rel (%p1941_p10) target bundleno = 594 (0x252), region = 24  ;;  %s163_s24 = sand.u32 (!%p1941_p10), 1, %s1737_s10  }
  0x77   : > { %s1437_s18 = sshll.u32 (!%p1941_p10), %s163_s24, 7  ;;  %s164_s6 = scalar_lea.sflag (!%p1941_p10), [#allocation8], %s163_s24 }
  0x78   : > { %s1985_s15 = scalar_lea.vmem (!%p1941_p10), [#allocation7], %s1437_s18  ;;  %p3462_p4 = scmp.ne.s32.totalorder (!%p1941_p10), %s3455_s23, 0 }
  0x7d   : > { %1712 = dma.done.wait (%p3462_p4), %s164_s6, 2048  }
  0x7e   : > { %1714 = vsyncadd (%p3462_p4), %s164_s6, 4294965248  ;;  %s183_s17 = sand.u32 1, %s1725_s7   ;;  %p1439_p12 = scmp.ne.s32.totalorder %s1745_s12, 0 }
  0x7f   : > { %s1994_s11 = sshll.u32 %s183_s17, 3  ;;  %v1769_v0 = vmov (!%p1439_p12), -inf  }
  0x80   : > { %s185_s29 = scalar_lea.vmem [#allocation10], %s1994_s11  ;;  %198 = sbr.rel (%p1439_p12) target bundleno = 135 (0x87), region = 32  ;;  %199 = vst [vmem:[#allocation2] sm:$0xff] (!%p1439_p12), %v1769_v0 }
  0x87 PF: > { %s200_s1 = sld [smem:[#allocation5 + %s1749_s13]] }
  0x8d   : > { %p1440_p1 = scmp.ge.s32.totalorder %s1745_s12, %s200_s1 }
  0x8e   : > { %v2001_v1 = vld [vmem:[%s1985_s15] sm:$0xff] (!%p1440_p1)  ;;  %v2004_v2 = vld [vmem:[%s1985_s15 + $0x8] sm:$0xff] (!%p1440_p1)  ;;  %v2007_v3 = vld [vmem:[%s1985_s15 + $0x10] sm:$0xff] (!%p1440_p1)  ;;  %s2010_s23 = sld [smem:[#allocation4 + %s1749_s13]] (!%p1440_p1)  ;;  %v224_v4 = vlaneseq (!%p1440_p1)  ;;  %s2013_s26 = sshll.u32 (!%p1440_p1), %s1749_s13, 3 }
  0x8f   : > { %204 = sbr.rel (%p1440_p1) target bundleno = 560 (0x230), region = 36  ;;  %v2016_v5 = vld [vmem:[%s1985_s15 + $0x18] sm:$0xff] (!%p1440_p1)  ;;  %v2019_v6 = vld [vmem:[%s1985_s15 + $0x20] sm:$0xff] (!%p1440_p1)  ;;  %v2022_v7 = vld [vmem:[%s1985_s15 + $0x28] sm:$0xff] (!%p1440_p1)  ;;  %s2025_s22 = sld [smem:[#allocation6 + %s2013_s26]] (!%p1440_p1) }
  0x90   : > { %s260_s21 = sadd.s32 (!%p1440_p1), 1, %s2013_s26  ;;  %v2029_v8 = vld [vmem:[%s1985_s15 + $0x30] sm:$0xff] (!%p1440_p1)  ;;  %v2032_v9 = vld [vmem:[%s1985_s15 + $0x38] sm:$0xff] (!%p1440_p1)  ;;  %v2035_v10 = vld [vmem:[%s1985_s15 + $0x40] sm:$0xff] (!%p1440_p1)  ;;  %v225_v11 = vshrl.u32 (!%p1440_p1), %v224_v4, 7 }
  0x91   : > { %s2039_s30 = sld [smem:[#allocation6 + %s260_s21]] (!%p1440_p1)  ;;  %v2042_v12 = vld [vmem:[%s1985_s15 + $0x48] sm:$0xff] (!%p1440_p1)  ;;  %v2045_v13 = vld [vmem:[%s1985_s15 + $0x50] sm:$0xff] (!%p1440_p1)  ;;  %v2048_v14 = vld [vmem:[%s1985_s15 + $0x58] sm:$0xff] (!%p1440_p1) }
  0x92   : > { %v2051_v15 = vld [vmem:[%s1985_s15 + $0x60] sm:$0xff] (!%p1440_p1)  ;;  %v2054_v16 = vld [vmem:[%s1985_s15 + $0x68] sm:$0xff] (!%p1440_p1)  ;;  %v2057_v17 = vld [vmem:[%s1985_s15 + $0x70] sm:$0xff] (!%p1440_p1)  ;;  %v226_v19 = vadd.s32 (!%p1440_p1), 8, %v225_v11  ;;  %v227_v20 = vadd.s32 (!%p1440_p1), 16, %v225_v11  ;;  %v228_v21 = vadd.s32 (!%p1440_p1), 24, %v225_v11 }
  0x93   : > { %v2060_v18 = vld [vmem:[%s1985_s15 + $0x78] sm:$0xff] (!%p1440_p1)  ;;  %v229_v22 = vadd.s32 (!%p1440_p1), 32, %v225_v11  ;;  %v230_v23 = vadd.s32 (!%p1440_p1), 40, %v225_v11  ;;  %v231_v24 = vadd.s32 (!%p1440_p1), 48, %v225_v11  ;;  %v232_v25 = vadd.s32 (!%p1440_p1), 56, %v225_v11 }
  0x94   : > { %s222_s9 = sadd.s32 (!%p1440_p1), %s1745_s12, %s2010_s23  ;;  %v233_v26 = vadd.s32 (!%p1440_p1), 64, %v225_v11  ;;  %v234_v27 = vadd.s32 (!%p1440_p1), 72, %v225_v11  ;;  %v235_v28 = vadd.s32 (!%p1440_p1), 80, %v225_v11  ;;  %v236_v29 = vadd.s32 (!%p1440_p1), 88, %v225_v11 }
  0x95   : > { %s2064_s19 = sshll.u32 (!%p1440_p1), %s222_s9, 7  ;;  %v237_v30 = vadd.s32 (!%p1440_p1), 96, %v225_v11  ;;  %v238_v31 = vadd.s32 (!%p1440_p1), 104, %v225_v11  ;;  %v239_v32 = vadd.s32 (!%p1440_p1), 112, %v225_v11  ;;  %v240_v33 = vadd.s32 (!%p1440_p1), 120, %v225_v11 }
  0x96   : > { %v241_v34 = vstv %s2064_s19  ;;  %p262_p5 = scmp.gt.s32.totalorder %s2025_s22, %s2064_s19  ;;  %s2070_s20 = sadd.s32 128, %s2064_s19 }
  0x97   : > { %v2072_v35 = vadd.s32 %v241_v34, %v225_v11  ;;  %v2074_v36 = vadd.s32 %v241_v34, %v226_v19  ;;  %v2076_v37 = vadd.s32 %v241_v34, %v227_v20  ;;  %v2078_v38 = vadd.s32 %v241_v34, %v228_v21  ;;  %p265_p10 = scmp.lt.s32.totalorder %s2039_s30, %s2070_s20 }
  0x98   : > { %v2082_v39 = vadd.s32 %v241_v34, %v229_v22  ;;  %v2084_v40 = vadd.s32 %v241_v34, %v230_v23  ;;  %v2086_v41 = vadd.s32 %v241_v34, %v231_v24  ;;  %v2088_v42 = vadd.s32 %v241_v34, %v232_v25  ;;  %s263_s25 = scalar_select %p262_p5, %s2025_s22, %s2064_s19 }
  0x99   : > { %v2092_v43 = vadd.s32 %v241_v34, %v233_v26  ;;  %v2094_v44 = vadd.s32 %v241_v34, %v234_v27  ;;  %v2096_v45 = vadd.s32 %v241_v34, %v235_v28  ;;  %v2098_v46 = vadd.s32 %v241_v34, %v236_v29  ;;  %s266_s27 = scalar_select %p265_p10, %s2039_s30, %s2070_s20 }
  0x9a   : > { %v2102_v47 = vadd.s32 %v241_v34, %v237_v30  ;;  %v2104_v48 = vadd.s32 %v241_v34, %v238_v31  ;;  %v2106_v49 = vadd.s32 %v241_v34, %v239_v32  ;;  %v2108_v50 = vadd.s32 %v241_v34, %v240_v33 }
  0x9b   : > { %p1443_p2 = scmp.ge.s32.totalorder %s263_s25, %s266_s27 }
  0x9c   : > { %v2111_v51 = vstv (!%p1443_p2), %s2025_s22  ;;  %v2114_v52 = vstv (!%p1443_p2), %s2039_s30 }
  0x9d   : > { %270 = sbr.rel (%p1443_p2) target bundleno = 196 (0xc4), region = 40  ;;  %vm272_vm0 = vcmp.ge.s32.totalorder (!%p1443_p2), %v2072_v35, %v2111_v51  ;;  %vm273_vm1 = vcmp.ge.s32.totalorder (!%p1443_p2), %v2074_v36, %v2111_v51  ;;  %vm274_vm2 = vcmp.ge.s32.totalorder (!%p1443_p2), %v2076_v37, %v2111_v51  ;;  %vm289_vm3 = vcmp.lt.s32.totalorder (!%p1443_p2), %v2072_v35, %v2114_v52 }
  0x9e   : > { %vm290_vm4 = vcmp.lt.s32.totalorder (!%p1443_p2), %v2074_v36, %v2114_v52  ;;  %vm291_vm5 = vcmp.lt.s32.totalorder (!%p1443_p2), %v2076_v37, %v2114_v52  ;;  %vm275_vm6 = vcmp.ge.s32.totalorder (!%p1443_p2), %v2078_v38, %v2111_v51  ;;  %vm292_vm7 = vcmp.lt.s32.totalorder (!%p1443_p2), %v2078_v38, %v2114_v52  ;;  %vm2132_vm8 = vmand (!%p1443_p2), %vm272_vm0, %vm289_vm3 }
  0x9f   : > { %vm276_vm9 = vcmp.ge.s32.totalorder (!%p1443_p2), %v2082_v39, %v2111_v51  ;;  %vm293_vm10 = vcmp.lt.s32.totalorder (!%p1443_p2), %v2082_v39, %v2114_v52  ;;  %vm2140_vm11 = vmand (!%p1443_p2), %vm273_vm1, %vm290_vm4  ;;  %vm277_vm12 = vcmp.ge.s32.totalorder (!%p1443_p2), %v2084_v40, %v2111_v51  ;;  %vm294_vm13 = vcmp.lt.s32.totalorder (!%p1443_p2), %v2084_v40, %v2114_v52 }
  0xa0   : > { %vm2148_vm14 = vmand (!%p1443_p2), %vm274_vm2, %vm291_vm5  ;;  %vm278_vm15 = vcmp.ge.s32.totalorder (!%p1443_p2), %v2086_v41, %v2111_v51  ;;  %vm295_vm0 = vcmp.lt.s32.totalorder (!%p1443_p2), %v2086_v41, %v2114_v52  ;;  %v353_v57 = vsel (!%p1443_p2), %vm2132_vm8, %v2001_v1, -inf  ;;  %vm279_vm2 = vcmp.ge.s32.totalorder (!%p1443_p2), %v2088_v42, %v2111_v51 }
  0xa1   : > { %vm2156_vm1 = vmand (!%p1443_p2), %vm275_vm6, %vm292_vm7  ;;  %vm280_vm3 = vcmp.ge.s32.totalorder (!%p1443_p2), %v2092_v43, %v2111_v51  ;;  %vm296_vm4 = vcmp.lt.s32.totalorder (!%p1443_p2), %v2088_v42, %v2114_v52  ;;  %v354_v58 = vsel (!%p1443_p2), %vm2140_vm11, %v2004_v2, -inf  ;;  %vm281_vm6 = vcmp.ge.s32.totalorder (!%p1443_p2), %v2094_v44, %v2111_v51 }
  0xa2   : > { %vm309_vm5 = vmand (!%p1443_p2), %vm276_vm9, %vm293_vm10  ;;  %vm297_vm7 = vcmp.lt.s32.totalorder (!%p1443_p2), %v2092_v43, %v2114_v52  ;;  %v355_v59 = vsel (!%p1443_p2), %vm2148_vm14, %v2007_v3, -inf  ;;  %vm298_vm9 = vcmp.lt.s32.totalorder (!%p1443_p2), %v2094_v44, %v2114_v52  ;;  %v356_v61 = vsel (!%p1443_p2), %vm2156_vm1, %v2016_v5, -inf }
  0xa3   : > { %vm310_vm8 = vmand (!%p1443_p2), %vm277_vm12, %vm294_vm13  ;;  %v357_v60 = vsel (!%p1443_p2), %vm309_vm5, %v2019_v6, -inf  ;;  %vm282_vm11 = vcmp.ge.s32.totalorder (!%p1443_p2), %v2096_v45, %v2111_v51  ;;  %vm299_vm12 = vcmp.lt.s32.totalorder (!%p1443_p2), %v2096_v45, %v2114_v52  ;;  %vm283_vm14 = vcmp.ge.s32.totalorder (!%p1443_p2), %v2098_v46, %v2111_v51 }
  0xa4   : > { %vm311_vm10 = vmand %vm278_vm15, %vm295_vm0  ;;  %v358_v62 = vsel %vm310_vm8, %v2022_v7, -inf  ;;  %v369_v63 = vmax.f32 %v353_v57, %v357_v60  ;;  %vm300_vm15 = vcmp.lt.s32.totalorder %v2098_v46, %v2114_v52  ;;  %vm284_vm1 = vcmp.ge.s32.totalorder %v2102_v47, %v2111_v51 }
  0xa5   : > { %vm312_vm13 = vmand %vm279_vm2, %vm296_vm4  ;;  %v359_v0 = vsel %vm311_vm10, %v2029_v8, -inf  ;;  %v370_v4 = vmax.f32 %v354_v58, %v358_v62  ;;  %vm301_vm2 = vcmp.lt.s32.totalorder %v2102_v47, %v2114_v52  ;;  %vm302_vm5 = vcmp.lt.s32.totalorder %v2104_v48, %v2114_v52 }
  0xa6   : > { %vm313_vm0 = vmand %vm280_vm3, %vm297_vm7  ;;  %v360_v11 = vsel %vm312_vm13, %v2032_v9, -inf  ;;  %v371_v19 = vmax.f32 %v355_v59, %v359_v0  ;;  %vm285_vm3 = vcmp.ge.s32.totalorder %v2104_v48, %v2111_v51  ;;  %vm303_vm8 = vcmp.lt.s32.totalorder %v2106_v49, %v2114_v52 }
  0xa7   : > { %vm314_vm4 = vmand %vm281_vm6, %vm298_vm9  ;;  %v361_v20 = vsel %vm313_vm0, %v2035_v10, -inf  ;;  %v372_v21 = vmax.f32 %v356_v61, %v360_v11  ;;  %vm286_vm6 = vcmp.ge.s32.totalorder %v2106_v49, %v2111_v51  ;;  %vm287_vm10 = vcmp.ge.s32.totalorder %v2108_v50, %v2111_v51  ;;  %v390_v61 = vld [vmem:[#allocation2] sm:$0x1] }
  0xa8   : > { %vm315_vm7 = vmand %vm282_vm11, %vm299_vm12  ;;  %v362_v22 = vsel %vm314_vm4, %v2042_v12, -inf  ;;  %v373_v23 = vmax.f32 %v369_v63, %v361_v20  ;;  %vm304_vm11 = vcmp.lt.s32.totalorder %v2108_v50, %v2114_v52 }
  0xa9   : > { %vm316_vm9 = vmand %vm283_vm14, %vm300_vm15  ;;  %v363_v24 = vsel %vm315_vm7, %v2045_v13, -inf  ;;  %v374_v25 = vmax.f32 %v370_v4, %v362_v22 }
  0xaa   : > { %vm317_vm12 = vmand %vm284_vm1, %vm301_vm2  ;;  %v364_v26 = vsel %vm316_vm9, %v2048_v14, -inf  ;;  %v375_v27 = vmax.f32 %v371_v19, %v363_v24 }
  0xab   : > { %vm318_vm13 = vmand %vm285_vm3, %vm302_vm5  ;;  %v365_v28 = vsel %vm317_vm12, %v2051_v15, -inf  ;;  %v376_v29 = vmax.f32 %v372_v21, %v364_v26 }
  0xac   : > { %vm319_vm14 = vmand %vm286_vm6, %vm303_vm8  ;;  %v366_v30 = vsel %vm318_vm13, %v2054_v16, -inf  ;;  %v377_v31 = vmax.f32 %v373_v23, %v365_v28 }
  0xad   : > { %vm320_vm15 = vmand %vm287_vm10, %vm304_vm11  ;;  %v367_v32 = vsel %vm319_vm14, %v2057_v17, -inf  ;;  %v378_v33 = vmax.f32 %v374_v25, %v366_v30 }
  0xae   : > { %v368_v34 = vsel %vm320_vm15, %v2060_v18, -inf  ;;  %v379_v52 = vmax.f32 %v375_v27, %v367_v32 }
  0xaf   : > { %v380_v53 = vmax.f32 %v376_v29, %v368_v34  ;;  %v381_v54 = vmax.f32 %v377_v31, %v378_v33 }
  0xb1   : > { %v382_v55 = vmax.f32 %v379_v52, %v380_v53 }
  0xb3   : > { %v383_v56 = vmax.f32 %v381_v54, %v382_v55 }
  0xb5   : > { %v384_v51 = vrot.slane %v383_v56, 4 }
  0xb7   : > { %v385_v57 = vmax.f32 %v383_v56, %v384_v51 }
  0xb9   : > { %v386_v58 = vrot.slane %v385_v57, 2 }
  0xbb   : > { %v387_v59 = vmax.f32 %v385_v57, %v386_v58 }
  0xbd   : > { %v388_v60 = vrot.slane %v387_v59, 1 }
  0xbf   : > { %v389_v62 = vmax.f32 %v387_v59, %v388_v60 }
  0xc1   : > { %v391_v63 = vmax.f32 %v390_v61, %v389_v62 }
  0xc3   : > { %392 = vst [vmem:[#allocation2] sm:$0x1] %v391_v63 }
  0xc4 PF: > { %s393_s24 = sld [smem:[#allocation6 + %s260_s21]]  ;;  %s394_s18 = sadd.s32 2, %s2013_s26 }
  0xc5   : > { %s395_s6 = sld [smem:[#allocation6 + %s394_s18]] }
  0xca   : > { %p396_p6 = scmp.gt.s32.totalorder %s393_s24, %s2064_s19 }
  0xcb   : > { %p398_p11 = scmp.lt.s32.totalorder %s395_s6, %s2070_s20 }
  0xcc   : > { %s397_s15 = scalar_select %p396_p6, %s393_s24, %s2064_s19 }
  0xcd   : > { %s399_s1 = scalar_select %p398_p11, %s395_s6, %s2070_s20 }
  0xcf   : > { %p1444_p13 = scmp.ge.s32.totalorder %s397_s15, %s399_s1 }
  0xd0   : > { %v2271_v0 = vstv (!%p1444_p13), %s393_s24  ;;  %v2273_v4 = vstv (!%p1444_p13), %s395_s6 }
  0xd1   : > { %403 = sbr.rel (%p1444_p13) target bundleno = 248 (0xf8), region = 44  ;;  %vm405_vm0 = vcmp.ge.s32.totalorder (!%p1444_p13), %v2072_v35, %v2271_v0  ;;  %vm406_vm1 = vcmp.ge.s32.totalorder (!%p1444_p13), %v2074_v36, %v2271_v0  ;;  %vm407_vm2 = vcmp.ge.s32.totalorder (!%p1444_p13), %v2076_v37, %v2271_v0  ;;  %vm422_vm4 = vcmp.lt.s32.totalorder (!%p1444_p13), %v2072_v35, %v2273_v4 }
  0xd2   : > { %vm423_vm3 = vcmp.lt.s32.totalorder (!%p1444_p13), %v2074_v36, %v2273_v4  ;;  %vm424_vm5 = vcmp.lt.s32.totalorder (!%p1444_p13), %v2076_v37, %v2273_v4  ;;  %vm408_vm7 = vcmp.ge.s32.totalorder (!%p1444_p13), %v2078_v38, %v2271_v0  ;;  %vm425_vm6 = vcmp.lt.s32.totalorder (!%p1444_p13), %v2078_v38, %v2273_v4  ;;  %vm2291_vm8 = vmand (!%p1444_p13), %vm405_vm0, %vm422_vm4 }
  0xd3   : > { %vm409_vm9 = vcmp.ge.s32.totalorder (!%p1444_p13), %v2082_v39, %v2271_v0  ;;  %vm426_vm10 = vcmp.lt.s32.totalorder (!%p1444_p13), %v2082_v39, %v2273_v4  ;;  %vm2299_vm11 = vmand (!%p1444_p13), %vm406_vm1, %vm423_vm3  ;;  %vm410_vm12 = vcmp.ge.s32.totalorder (!%p1444_p13), %v2084_v40, %v2271_v0  ;;  %vm427_vm13 = vcmp.lt.s32.totalorder (!%p1444_p13), %v2084_v40, %v2273_v4 }
  0xd4   : > { %vm2307_vm14 = vmand (!%p1444_p13), %vm407_vm2, %vm424_vm5  ;;  %vm411_vm15 = vcmp.ge.s32.totalorder (!%p1444_p13), %v2086_v41, %v2271_v0  ;;  %vm428_vm0 = vcmp.lt.s32.totalorder (!%p1444_p13), %v2086_v41, %v2273_v4  ;;  %v486_v22 = vsel (!%p1444_p13), %vm2291_vm8, %v2001_v1, -inf  ;;  %vm412_vm2 = vcmp.ge.s32.totalorder (!%p1444_p13), %v2088_v42, %v2271_v0 }
  0xd5   : > { %vm2315_vm1 = vmand (!%p1444_p13), %vm408_vm7, %vm425_vm6  ;;  %vm413_vm4 = vcmp.ge.s32.totalorder (!%p1444_p13), %v2092_v43, %v2271_v0  ;;  %vm429_vm3 = vcmp.lt.s32.totalorder (!%p1444_p13), %v2088_v42, %v2273_v4  ;;  %v487_v23 = vsel (!%p1444_p13), %vm2299_vm11, %v2004_v2, -inf  ;;  %vm414_vm7 = vcmp.ge.s32.totalorder (!%p1444_p13), %v2094_v44, %v2271_v0 }
  0xd6   : > { %vm442_vm5 = vmand (!%p1444_p13), %vm409_vm9, %vm426_vm10  ;;  %vm430_vm6 = vcmp.lt.s32.totalorder (!%p1444_p13), %v2092_v43, %v2273_v4  ;;  %v488_v24 = vsel (!%p1444_p13), %vm2307_vm14, %v2007_v3, -inf  ;;  %vm431_vm9 = vcmp.lt.s32.totalorder (!%p1444_p13), %v2094_v44, %v2273_v4  ;;  %v489_v26 = vsel (!%p1444_p13), %vm2315_vm1, %v2016_v5, -inf }
  0xd7   : > { %vm443_vm8 = vmand (!%p1444_p13), %vm410_vm12, %vm427_vm13  ;;  %v490_v25 = vsel (!%p1444_p13), %vm442_vm5, %v2019_v6, -inf  ;;  %vm415_vm11 = vcmp.ge.s32.totalorder (!%p1444_p13), %v2096_v45, %v2271_v0  ;;  %vm432_vm12 = vcmp.lt.s32.totalorder (!%p1444_p13), %v2096_v45, %v2273_v4  ;;  %vm416_vm14 = vcmp.ge.s32.totalorder (!%p1444_p13), %v2098_v46, %v2271_v0 }
  0xd8   : > { %vm444_vm10 = vmand %vm411_vm15, %vm428_vm0  ;;  %v491_v27 = vsel %vm443_vm8, %v2022_v7, -inf  ;;  %v502_v28 = vmax.f32 %v486_v22, %v490_v25  ;;  %vm433_vm15 = vcmp.lt.s32.totalorder %v2098_v46, %v2273_v4  ;;  %vm417_vm1 = vcmp.ge.s32.totalorder %v2102_v47, %v2271_v0 }
  0xd9   : > { %vm445_vm13 = vmand %vm412_vm2, %vm429_vm3  ;;  %v492_v29 = vsel %vm444_vm10, %v2029_v8, -inf  ;;  %v503_v30 = vmax.f32 %v487_v23, %v491_v27  ;;  %vm434_vm2 = vcmp.lt.s32.totalorder %v2102_v47, %v2273_v4  ;;  %vm435_vm5 = vcmp.lt.s32.totalorder %v2104_v48, %v2273_v4 }
  0xda   : > { %vm446_vm0 = vmand %vm413_vm4, %vm430_vm6  ;;  %v493_v31 = vsel %vm445_vm13, %v2032_v9, -inf  ;;  %v504_v32 = vmax.f32 %v488_v24, %v492_v29  ;;  %vm418_vm4 = vcmp.ge.s32.totalorder %v2104_v48, %v2271_v0  ;;  %vm436_vm8 = vcmp.lt.s32.totalorder %v2106_v49, %v2273_v4 }
  0xdb   : > { %vm447_vm3 = vmand %vm414_vm7, %vm431_vm9  ;;  %v494_v33 = vsel %vm446_vm0, %v2035_v10, -inf  ;;  %v505_v34 = vmax.f32 %v489_v26, %v493_v31  ;;  %vm419_vm7 = vcmp.ge.s32.totalorder %v2106_v49, %v2271_v0  ;;  %vm420_vm10 = vcmp.ge.s32.totalorder %v2108_v50, %v2271_v0  ;;  %v523_v26 = vld [vmem:[#allocation2 + $0x1] sm:$0x1] }
  0xdc   : > { %vm448_vm6 = vmand %vm415_vm11, %vm432_vm12  ;;  %v495_v52 = vsel %vm447_vm3, %v2042_v12, -inf  ;;  %v506_v53 = vmax.f32 %v502_v28, %v494_v33  ;;  %vm437_vm11 = vcmp.lt.s32.totalorder %v2108_v50, %v2273_v4 }
  0xdd   : > { %vm449_vm9 = vmand %vm416_vm14, %vm433_vm15  ;;  %v496_v54 = vsel %vm448_vm6, %v2045_v13, -inf  ;;  %v507_v55 = vmax.f32 %v503_v30, %v495_v52 }
  0xde   : > { %vm450_vm12 = vmand %vm417_vm1, %vm434_vm2  ;;  %v497_v56 = vsel %vm449_vm9, %v2048_v14, -inf  ;;  %v508_v51 = vmax.f32 %v504_v32, %v496_v54 }
  0xdf   : > { %vm451_vm13 = vmand %vm418_vm4, %vm435_vm5  ;;  %v498_v57 = vsel %vm450_vm12, %v2051_v15, -inf  ;;  %v509_v58 = vmax.f32 %v505_v34, %v497_v56 }
  0xe0   : > { %vm452_vm14 = vmand %vm419_vm7, %vm436_vm8  ;;  %v499_v59 = vsel %vm451_vm13, %v2054_v16, -inf  ;;  %v510_v60 = vmax.f32 %v506_v53, %v498_v57 }
  0xe1   : > { %vm453_vm15 = vmand %vm420_vm10, %vm437_vm11  ;;  %v500_v61 = vsel %vm452_vm14, %v2057_v17, -inf  ;;  %v511_v62 = vmax.f32 %v507_v55, %v499_v59 }
  0xe2   : > { %v501_v63 = vsel %vm453_vm15, %v2060_v18, -inf  ;;  %v512_v4 = vmax.f32 %v508_v51, %v500_v61 }
  0xe3   : > { %v513_v11 = vmax.f32 %v509_v58, %v501_v63  ;;  %v514_v19 = vmax.f32 %v510_v60, %v511_v62 }
  0xe5   : > { %v515_v20 = vmax.f32 %v512_v4, %v513_v11 }
  0xe7   : > { %v516_v21 = vmax.f32 %v514_v19, %v515_v20 }
  0xe9   : > { %v517_v0 = vrot.slane %v516_v21, 4 }
  0xeb   : > { %v518_v22 = vmax.f32 %v516_v21, %v517_v0 }
  0xed   : > { %v519_v23 = vrot.slane %v518_v22, 2 }
  0xef   : > { %v520_v24 = vmax.f32 %v518_v22, %v519_v23 }
  0xf1   : > { %v521_v25 = vrot.slane %v520_v24, 1 }
  0xf3   : > { %v522_v27 = vmax.f32 %v520_v24, %v521_v25 }
  0xf5   : > { %v524_v28 = vmax.f32 %v523_v26, %v522_v27 }
  0xf7   : > { %525 = vst [vmem:[#allocation2 + $0x1] sm:$0x1] %v524_v28 }
  0xf8 PF: > { %s526_s23 = sld [smem:[#allocation6 + %s394_s18]]  ;;  %s527_s22 = sadd.s32 3, %s2013_s26 }
  0xf9   : > { %s528_s21 = sld [smem:[#allocation6 + %s527_s22]] }
  0xfe   : > { %p529_p0 = scmp.gt.s32.totalorder %s526_s23, %s2064_s19 }
  0xff   : > { %p531_p3 = scmp.lt.s32.totalorder %s528_s21, %s2070_s20 }
 0x100   : > { %s530_s30 = scalar_select %p529_p0, %s526_s23, %s2064_s19 }
 0x101   : > { %s532_s9 = scalar_select %p531_p3, %s528_s21, %s2070_s20 }
 0x103   : > { %p1445_p7 = scmp.ge.s32.totalorder %s530_s30, %s532_s9 }
 0x104   : > { %v2430_v29 = vstv (!%p1445_p7), %s526_s23  ;;  %v2432_v30 = vstv (!%p1445_p7), %s528_s21 }
 0x105   : > { %536 = sbr.rel (%p1445_p7) target bundleno = 300 (0x12c), region = 48  ;;  %vm538_vm0 = vcmp.ge.s32.totalorder (!%p1445_p7), %v2072_v35, %v2430_v29  ;;  %vm539_vm1 = vcmp.ge.s32.totalorder (!%p1445_p7), %v2074_v36, %v2430_v29  ;;  %vm540_vm2 = vcmp.ge.s32.totalorder (!%p1445_p7), %v2076_v37, %v2430_v29  ;;  %vm555_vm3 = vcmp.lt.s32.totalorder (!%p1445_p7), %v2072_v35, %v2432_v30 }
 0x106   : > { %vm556_vm4 = vcmp.lt.s32.totalorder (!%p1445_p7), %v2074_v36, %v2432_v30  ;;  %vm557_vm5 = vcmp.lt.s32.totalorder (!%p1445_p7), %v2076_v37, %v2432_v30  ;;  %vm541_vm6 = vcmp.ge.s32.totalorder (!%p1445_p7), %v2078_v38, %v2430_v29  ;;  %vm558_vm7 = vcmp.lt.s32.totalorder (!%p1445_p7), %v2078_v38, %v2432_v30  ;;  %vm2450_vm8 = vmand (!%p1445_p7), %vm538_vm0, %vm555_vm3 }
 0x107   : > { %vm542_vm9 = vcmp.ge.s32.totalorder (!%p1445_p7), %v2082_v39, %v2430_v29  ;;  %vm559_vm10 = vcmp.lt.s32.totalorder (!%p1445_p7), %v2082_v39, %v2432_v30  ;;  %vm2458_vm11 = vmand (!%p1445_p7), %vm539_vm1, %vm556_vm4  ;;  %vm543_vm12 = vcmp.ge.s32.totalorder (!%p1445_p7), %v2084_v40, %v2430_v29  ;;  %vm560_vm13 = vcmp.lt.s32.totalorder (!%p1445_p7), %v2084_v40, %v2432_v30 }
 0x108   : > { %vm2466_vm14 = vmand (!%p1445_p7), %vm540_vm2, %vm557_vm5  ;;  %vm544_vm15 = vcmp.ge.s32.totalorder (!%p1445_p7), %v2086_v41, %v2430_v29  ;;  %vm561_vm0 = vcmp.lt.s32.totalorder (!%p1445_p7), %v2086_v41, %v2432_v30  ;;  %v619_v52 = vsel (!%p1445_p7), %vm2450_vm8, %v2001_v1, -inf  ;;  %vm545_vm2 = vcmp.ge.s32.totalorder (!%p1445_p7), %v2088_v42, %v2430_v29 }
 0x109   : > { %vm2474_vm1 = vmand (!%p1445_p7), %vm541_vm6, %vm558_vm7  ;;  %vm546_vm3 = vcmp.ge.s32.totalorder (!%p1445_p7), %v2092_v43, %v2430_v29  ;;  %vm562_vm4 = vcmp.lt.s32.totalorder (!%p1445_p7), %v2088_v42, %v2432_v30  ;;  %v620_v53 = vsel (!%p1445_p7), %vm2458_vm11, %v2004_v2, -inf  ;;  %vm547_vm6 = vcmp.ge.s32.totalorder (!%p1445_p7), %v2094_v44, %v2430_v29 }
 0x10a   : > { %vm575_vm5 = vmand (!%p1445_p7), %vm542_vm9, %vm559_vm10  ;;  %vm563_vm7 = vcmp.lt.s32.totalorder (!%p1445_p7), %v2092_v43, %v2432_v30  ;;  %v621_v54 = vsel (!%p1445_p7), %vm2466_vm14, %v2007_v3, -inf  ;;  %vm564_vm9 = vcmp.lt.s32.totalorder (!%p1445_p7), %v2094_v44, %v2432_v30  ;;  %v622_v56 = vsel (!%p1445_p7), %vm2474_vm1, %v2016_v5, -inf }
 0x10b   : > { %vm576_vm8 = vmand (!%p1445_p7), %vm543_vm12, %vm560_vm13  ;;  %v623_v55 = vsel (!%p1445_p7), %vm575_vm5, %v2019_v6, -inf  ;;  %vm548_vm11 = vcmp.ge.s32.totalorder (!%p1445_p7), %v2096_v45, %v2430_v29  ;;  %vm565_vm12 = vcmp.lt.s32.totalorder (!%p1445_p7), %v2096_v45, %v2432_v30  ;;  %vm549_vm14 = vcmp.ge.s32.totalorder (!%p1445_p7), %v2098_v46, %v2430_v29 }
 0x10c   : > { %vm577_vm10 = vmand %vm544_vm15, %vm561_vm0  ;;  %v624_v51 = vsel %vm576_vm8, %v2022_v7, -inf  ;;  %v635_v57 = vmax.f32 %v619_v52, %v623_v55  ;;  %vm566_vm15 = vcmp.lt.s32.totalorder %v2098_v46, %v2432_v30  ;;  %vm550_vm1 = vcmp.ge.s32.totalorder %v2102_v47, %v2430_v29 }
 0x10d   : > { %vm578_vm13 = vmand %vm545_vm2, %vm562_vm4  ;;  %v625_v58 = vsel %vm577_vm10, %v2029_v8, -inf  ;;  %v636_v59 = vmax.f32 %v620_v53, %v624_v51  ;;  %vm567_vm2 = vcmp.lt.s32.totalorder %v2102_v47, %v2432_v30  ;;  %vm568_vm5 = vcmp.lt.s32.totalorder %v2104_v48, %v2432_v30 }
 0x10e   : > { %vm579_vm0 = vmand %vm546_vm3, %vm563_vm7  ;;  %v626_v60 = vsel %vm578_vm13, %v2032_v9, -inf  ;;  %v637_v61 = vmax.f32 %v621_v54, %v625_v58  ;;  %vm551_vm3 = vcmp.ge.s32.totalorder %v2104_v48, %v2430_v29  ;;  %vm569_vm8 = vcmp.lt.s32.totalorder %v2106_v49, %v2432_v30 }
 0x10f   : > { %vm580_vm4 = vmand %vm547_vm6, %vm564_vm9  ;;  %v627_v62 = vsel %vm579_vm0, %v2035_v10, -inf  ;;  %v638_v63 = vmax.f32 %v622_v56, %v626_v60  ;;  %vm552_vm6 = vcmp.ge.s32.totalorder %v2106_v49, %v2430_v29  ;;  %vm553_vm10 = vcmp.ge.s32.totalorder %v2108_v50, %v2430_v29  ;;  %v656_v56 = vld [vmem:[#allocation2 + $0x2] sm:$0x1] }
 0x110   : > { %vm581_vm7 = vmand %vm548_vm11, %vm565_vm12  ;;  %v628_v4 = vsel %vm580_vm4, %v2042_v12, -inf  ;;  %v639_v11 = vmax.f32 %v635_v57, %v627_v62  ;;  %vm570_vm11 = vcmp.lt.s32.totalorder %v2108_v50, %v2432_v30 }
 0x111   : > { %vm582_vm9 = vmand %vm549_vm14, %vm566_vm15  ;;  %v629_v19 = vsel %vm581_vm7, %v2045_v13, -inf  ;;  %v640_v20 = vmax.f32 %v636_v59, %v628_v4 }
 0x112   : > { %vm583_vm12 = vmand %vm550_vm1, %vm567_vm2  ;;  %v630_v21 = vsel %vm582_vm9, %v2048_v14, -inf  ;;  %v641_v0 = vmax.f32 %v637_v61, %v629_v19 }
 0x113   : > { %vm584_vm13 = vmand %vm551_vm3, %vm568_vm5  ;;  %v631_v22 = vsel %vm583_vm12, %v2051_v15, -inf  ;;  %v642_v23 = vmax.f32 %v638_v63, %v630_v21 }
 0x114   : > { %vm585_vm14 = vmand %vm552_vm6, %vm569_vm8  ;;  %v632_v24 = vsel %vm584_vm13, %v2054_v16, -inf  ;;  %v643_v25 = vmax.f32 %v639_v11, %v631_v22 }
 0x115   : > { %vm586_vm15 = vmand %vm553_vm10, %vm570_vm11  ;;  %v633_v26 = vsel %vm585_vm14, %v2057_v17, -inf  ;;  %v644_v27 = vmax.f32 %v640_v20, %v632_v24 }
 0x116   : > { %v634_v28 = vsel %vm586_vm15, %v2060_v18, -inf  ;;  %v645_v30 = vmax.f32 %v641_v0, %v633_v26 }
 0x117   : > { %v646_v31 = vmax.f32 %v642_v23, %v634_v28  ;;  %v647_v32 = vmax.f32 %v643_v25, %v644_v27 }
 0x119   : > { %v648_v33 = vmax.f32 %v645_v30, %v646_v31 }
 0x11b   : > { %v649_v34 = vmax.f32 %v647_v32, %v648_v33 }
 0x11d   : > { %v650_v29 = vrot.slane %v649_v34, 4 }
 0x11f   : > { %v651_v52 = vmax.f32 %v649_v34, %v650_v29 }
 0x121   : > { %v652_v53 = vrot.slane %v651_v52, 2 }
 0x123   : > { %v653_v54 = vmax.f32 %v651_v52, %v652_v53 }
 0x125   : > { %v654_v55 = vrot.slane %v653_v54, 1 }
 0x127   : > { %v655_v51 = vmax.f32 %v653_v54, %v654_v55 }
 0x129   : > { %v657_v57 = vmax.f32 %v656_v56, %v655_v51 }
 0x12b   : > { %658 = vst [vmem:[#allocation2 + $0x2] sm:$0x1] %v657_v57 }
 0x12c PF: > { %s659_s25 = sld [smem:[#allocation6 + %s527_s22]]  ;;  %s660_s27 = sadd.s32 4, %s2013_s26 }
 0x12d   : > { %s661_s24 = sld [smem:[#allocation6 + %s660_s27]] }
 0x132   : > { %p662_p8 = scmp.gt.s32.totalorder %s659_s25, %s2064_s19 }
 0x133   : > { %p664_p9 = scmp.lt.s32.totalorder %s661_s24, %s2070_s20 }
 0x134   : > { %s663_s18 = scalar_select %p662_p8, %s659_s25, %s2064_s19 }
 0x135   : > { %s665_s6 = scalar_select %p664_p9, %s661_s24, %s2070_s20 }
 0x137   : > { %p1446_p4 = scmp.ge.s32.totalorder %s663_s18, %s665_s6 }
 0x138   : > { %v2589_v58 = vstv (!%p1446_p4), %s659_s25  ;;  %v2591_v59 = vstv (!%p1446_p4), %s661_s24 }
 0x139   : > { %669 = sbr.rel (%p1446_p4) target bundleno = 352 (0x160), region = 52  ;;  %vm671_vm0 = vcmp.ge.s32.totalorder (!%p1446_p4), %v2072_v35, %v2589_v58  ;;  %vm672_vm1 = vcmp.ge.s32.totalorder (!%p1446_p4), %v2074_v36, %v2589_v58  ;;  %vm673_vm2 = vcmp.ge.s32.totalorder (!%p1446_p4), %v2076_v37, %v2589_v58  ;;  %vm688_vm4 = vcmp.lt.s32.totalorder (!%p1446_p4), %v2072_v35, %v2591_v59 }
 0x13a   : > { %vm689_vm3 = vcmp.lt.s32.totalorder (!%p1446_p4), %v2074_v36, %v2591_v59  ;;  %vm690_vm5 = vcmp.lt.s32.totalorder (!%p1446_p4), %v2076_v37, %v2591_v59  ;;  %vm674_vm7 = vcmp.ge.s32.totalorder (!%p1446_p4), %v2078_v38, %v2589_v58  ;;  %vm691_vm6 = vcmp.lt.s32.totalorder (!%p1446_p4), %v2078_v38, %v2591_v59  ;;  %vm2609_vm8 = vmand (!%p1446_p4), %vm671_vm0, %vm688_vm4 }
 0x13b   : > { %vm675_vm9 = vcmp.ge.s32.totalorder (!%p1446_p4), %v2082_v39, %v2589_v58  ;;  %vm692_vm10 = vcmp.lt.s32.totalorder (!%p1446_p4), %v2082_v39, %v2591_v59  ;;  %vm2617_vm11 = vmand (!%p1446_p4), %vm672_vm1, %vm689_vm3  ;;  %vm676_vm12 = vcmp.ge.s32.totalorder (!%p1446_p4), %v2084_v40, %v2589_v58  ;;  %vm693_vm13 = vcmp.lt.s32.totalorder (!%p1446_p4), %v2084_v40, %v2591_v59 }
 0x13c   : > { %vm2625_vm14 = vmand (!%p1446_p4), %vm673_vm2, %vm690_vm5  ;;  %vm677_vm15 = vcmp.ge.s32.totalorder (!%p1446_p4), %v2086_v41, %v2589_v58  ;;  %vm694_vm0 = vcmp.lt.s32.totalorder (!%p1446_p4), %v2086_v41, %v2591_v59  ;;  %v752_v4 = vsel (!%p1446_p4), %vm2609_vm8, %v2001_v1, -inf  ;;  %vm678_vm2 = vcmp.ge.s32.totalorder (!%p1446_p4), %v2088_v42, %v2589_v58 }
 0x13d   : > { %vm2633_vm1 = vmand (!%p1446_p4), %vm674_vm7, %vm691_vm6  ;;  %vm679_vm4 = vcmp.ge.s32.totalorder (!%p1446_p4), %v2092_v43, %v2589_v58  ;;  %vm695_vm3 = vcmp.lt.s32.totalorder (!%p1446_p4), %v2088_v42, %v2591_v59  ;;  %v753_v11 = vsel (!%p1446_p4), %vm2617_vm11, %v2004_v2, -inf  ;;  %vm680_vm7 = vcmp.ge.s32.totalorder (!%p1446_p4), %v2094_v44, %v2589_v58 }
 0x13e   : > { %vm708_vm5 = vmand (!%p1446_p4), %vm675_vm9, %vm692_vm10  ;;  %vm696_vm6 = vcmp.lt.s32.totalorder (!%p1446_p4), %v2092_v43, %v2591_v59  ;;  %v754_v19 = vsel (!%p1446_p4), %vm2625_vm14, %v2007_v3, -inf  ;;  %vm697_vm9 = vcmp.lt.s32.totalorder (!%p1446_p4), %v2094_v44, %v2591_v59  ;;  %v755_v21 = vsel (!%p1446_p4), %vm2633_vm1, %v2016_v5, -inf }
 0x13f   : > { %vm709_vm8 = vmand (!%p1446_p4), %vm676_vm12, %vm693_vm13  ;;  %v756_v20 = vsel (!%p1446_p4), %vm708_vm5, %v2019_v6, -inf  ;;  %vm681_vm11 = vcmp.ge.s32.totalorder (!%p1446_p4), %v2096_v45, %v2589_v58  ;;  %vm698_vm12 = vcmp.lt.s32.totalorder (!%p1446_p4), %v2096_v45, %v2591_v59  ;;  %vm682_vm14 = vcmp.ge.s32.totalorder (!%p1446_p4), %v2098_v46, %v2589_v58 }
 0x140   : > { %vm710_vm10 = vmand %vm677_vm15, %vm694_vm0  ;;  %v757_v0 = vsel %vm709_vm8, %v2022_v7, -inf  ;;  %v768_v22 = vmax.f32 %v752_v4, %v756_v20  ;;  %vm699_vm15 = vcmp.lt.s32.totalorder %v2098_v46, %v2591_v59  ;;  %vm683_vm1 = vcmp.ge.s32.totalorder %v2102_v47, %v2589_v58 }
 0x141   : > { %vm711_vm13 = vmand %vm678_vm2, %vm695_vm3  ;;  %v758_v23 = vsel %vm710_vm10, %v2029_v8, -inf  ;;  %v769_v24 = vmax.f32 %v753_v11, %v757_v0  ;;  %vm700_vm2 = vcmp.lt.s32.totalorder %v2102_v47, %v2591_v59  ;;  %vm701_vm5 = vcmp.lt.s32.totalorder %v2104_v48, %v2591_v59 }
 0x142   : > { %vm712_vm0 = vmand %vm679_vm4, %vm696_vm6  ;;  %v759_v25 = vsel %vm711_vm13, %v2032_v9, -inf  ;;  %v770_v26 = vmax.f32 %v754_v19, %v758_v23  ;;  %vm684_vm4 = vcmp.ge.s32.totalorder %v2104_v48, %v2589_v58  ;;  %vm702_vm8 = vcmp.lt.s32.totalorder %v2106_v49, %v2591_v59 }
 0x143   : > { %vm713_vm3 = vmand %vm680_vm7, %vm697_vm9  ;;  %v760_v27 = vsel %vm712_vm0, %v2035_v10, -inf  ;;  %v771_v28 = vmax.f32 %v755_v21, %v759_v25  ;;  %vm685_vm7 = vcmp.ge.s32.totalorder %v2106_v49, %v2589_v58  ;;  %vm686_vm10 = vcmp.ge.s32.totalorder %v2108_v50, %v2589_v58  ;;  %v789_v21 = vld [vmem:[#allocation2 + $0x3] sm:$0x1] }
 0x144   : > { %vm714_vm6 = vmand %vm681_vm11, %vm698_vm12  ;;  %v761_v30 = vsel %vm713_vm3, %v2042_v12, -inf  ;;  %v772_v31 = vmax.f32 %v768_v22, %v760_v27  ;;  %vm703_vm11 = vcmp.lt.s32.totalorder %v2108_v50, %v2591_v59 }
 0x145   : > { %vm715_vm9 = vmand %vm682_vm14, %vm699_vm15  ;;  %v762_v32 = vsel %vm714_vm6, %v2045_v13, -inf  ;;  %v773_v33 = vmax.f32 %v769_v24, %v761_v30 }
 0x146   : > { %vm716_vm12 = vmand %vm683_vm1, %vm700_vm2  ;;  %v763_v34 = vsel %vm715_vm9, %v2048_v14, -inf  ;;  %v774_v29 = vmax.f32 %v770_v26, %v762_v32 }
 0x147   : > { %vm717_vm13 = vmand %vm684_vm4, %vm701_vm5  ;;  %v764_v52 = vsel %vm716_vm12, %v2051_v15, -inf  ;;  %v775_v53 = vmax.f32 %v771_v28, %v763_v34 }
 0x148   : > { %vm718_vm14 = vmand %vm685_vm7, %vm702_vm8  ;;  %v765_v54 = vsel %vm717_vm13, %v2054_v16, -inf  ;;  %v776_v55 = vmax.f32 %v772_v31, %v764_v52 }
 0x149   : > { %vm719_vm15 = vmand %vm686_vm10, %vm703_vm11  ;;  %v766_v56 = vsel %vm718_vm14, %v2057_v17, -inf  ;;  %v777_v51 = vmax.f32 %v773_v33, %v765_v54 }
 0x14a   : > { %v767_v57 = vsel %vm719_vm15, %v2060_v18, -inf  ;;  %v778_v59 = vmax.f32 %v774_v29, %v766_v56 }
 0x14b   : > { %v779_v60 = vmax.f32 %v775_v53, %v767_v57  ;;  %v780_v61 = vmax.f32 %v776_v55, %v777_v51 }
 0x14d   : > { %v781_v62 = vmax.f32 %v778_v59, %v779_v60 }
 0x14f   : > { %v782_v63 = vmax.f32 %v780_v61, %v781_v62 }
 0x151   : > { %v783_v58 = vrot.slane %v782_v63, 4 }
 0x153   : > { %v784_v4 = vmax.f32 %v782_v63, %v783_v58 }
 0x155   : > { %v785_v11 = vrot.slane %v784_v4, 2 }
 0x157   : > { %v786_v19 = vmax.f32 %v784_v4, %v785_v11 }
 0x159   : > { %v787_v20 = vrot.slane %v786_v19, 1 }
 0x15b   : > { %v788_v0 = vmax.f32 %v786_v19, %v787_v20 }
 0x15d   : > { %v790_v22 = vmax.f32 %v789_v21, %v788_v0 }
 0x15f   : > { %791 = vst [vmem:[#allocation2 + $0x3] sm:$0x1] %v790_v22 }
 0x160 PF: > { %s792_s15 = sld [smem:[#allocation6 + %s660_s27]]  ;;  %s793_s1 = sadd.s32 5, %s2013_s26 }
 0x161   : > { %s794_s23 = sld [smem:[#allocation6 + %s793_s1]] }
 0x166   : > { %p795_p12 = scmp.gt.s32.totalorder %s792_s15, %s2064_s19 }
 0x167   : > { %p797_p1 = scmp.lt.s32.totalorder %s794_s23, %s2070_s20 }
 0x168   : > { %s796_s22 = scalar_select %p795_p12, %s792_s15, %s2064_s19 }
 0x169   : > { %s798_s21 = scalar_select %p797_p1, %s794_s23, %s2070_s20 }
 0x16b   : > { %p1447_p5 = scmp.ge.s32.totalorder %s796_s22, %s798_s21 }
 0x16c   : > { %v2748_v23 = vstv (!%p1447_p5), %s792_s15  ;;  %v2750_v24 = vstv (!%p1447_p5), %s794_s23 }
 0x16d   : > { %802 = sbr.rel (%p1447_p5) target bundleno = 404 (0x194), region = 56  ;;  %vm804_vm0 = vcmp.ge.s32.totalorder (!%p1447_p5), %v2072_v35, %v2748_v23  ;;  %vm805_vm1 = vcmp.ge.s32.totalorder (!%p1447_p5), %v2074_v36, %v2748_v23  ;;  %vm806_vm2 = vcmp.ge.s32.totalorder (!%p1447_p5), %v2076_v37, %v2748_v23  ;;  %vm821_vm3 = vcmp.lt.s32.totalorder (!%p1447_p5), %v2072_v35, %v2750_v24 }
 0x16e   : > { %vm822_vm4 = vcmp.lt.s32.totalorder (!%p1447_p5), %v2074_v36, %v2750_v24  ;;  %vm823_vm5 = vcmp.lt.s32.totalorder (!%p1447_p5), %v2076_v37, %v2750_v24  ;;  %vm807_vm6 = vcmp.ge.s32.totalorder (!%p1447_p5), %v2078_v38, %v2748_v23  ;;  %vm824_vm7 = vcmp.lt.s32.totalorder (!%p1447_p5), %v2078_v38, %v2750_v24  ;;  %vm2768_vm8 = vmand (!%p1447_p5), %vm804_vm0, %vm821_vm3 }
 0x16f   : > { %vm808_vm9 = vcmp.ge.s32.totalorder (!%p1447_p5), %v2082_v39, %v2748_v23  ;;  %vm825_vm10 = vcmp.lt.s32.totalorder (!%p1447_p5), %v2082_v39, %v2750_v24  ;;  %vm2776_vm11 = vmand (!%p1447_p5), %vm805_vm1, %vm822_vm4  ;;  %vm809_vm12 = vcmp.ge.s32.totalorder (!%p1447_p5), %v2084_v40, %v2748_v23  ;;  %vm826_vm13 = vcmp.lt.s32.totalorder (!%p1447_p5), %v2084_v40, %v2750_v24 }
 0x170   : > { %vm2784_vm14 = vmand (!%p1447_p5), %vm806_vm2, %vm823_vm5  ;;  %vm810_vm15 = vcmp.ge.s32.totalorder (!%p1447_p5), %v2086_v41, %v2748_v23  ;;  %vm827_vm0 = vcmp.lt.s32.totalorder (!%p1447_p5), %v2086_v41, %v2750_v24  ;;  %v885_v30 = vsel (!%p1447_p5), %vm2768_vm8, %v2001_v1, -inf  ;;  %vm811_vm2 = vcmp.ge.s32.totalorder (!%p1447_p5), %v2088_v42, %v2748_v23 }
 0x171   : > { %vm2792_vm1 = vmand (!%p1447_p5), %vm807_vm6, %vm824_vm7  ;;  %vm812_vm3 = vcmp.ge.s32.totalorder (!%p1447_p5), %v2092_v43, %v2748_v23  ;;  %vm828_vm4 = vcmp.lt.s32.totalorder (!%p1447_p5), %v2088_v42, %v2750_v24  ;;  %v886_v31 = vsel (!%p1447_p5), %vm2776_vm11, %v2004_v2, -inf  ;;  %vm813_vm6 = vcmp.ge.s32.totalorder (!%p1447_p5), %v2094_v44, %v2748_v23 }
 0x172   : > { %vm841_vm5 = vmand (!%p1447_p5), %vm808_vm9, %vm825_vm10  ;;  %vm829_vm7 = vcmp.lt.s32.totalorder (!%p1447_p5), %v2092_v43, %v2750_v24  ;;  %v887_v32 = vsel (!%p1447_p5), %vm2784_vm14, %v2007_v3, -inf  ;;  %vm830_vm9 = vcmp.lt.s32.totalorder (!%p1447_p5), %v2094_v44, %v2750_v24  ;;  %v888_v34 = vsel (!%p1447_p5), %vm2792_vm1, %v2016_v5, -inf }
 0x173   : > { %vm842_vm8 = vmand (!%p1447_p5), %vm809_vm12, %vm826_vm13  ;;  %v889_v33 = vsel (!%p1447_p5), %vm841_vm5, %v2019_v6, -inf  ;;  %vm814_vm11 = vcmp.ge.s32.totalorder (!%p1447_p5), %v2096_v45, %v2748_v23  ;;  %vm831_vm12 = vcmp.lt.s32.totalorder (!%p1447_p5), %v2096_v45, %v2750_v24  ;;  %vm815_vm14 = vcmp.ge.s32.totalorder (!%p1447_p5), %v2098_v46, %v2748_v23 }
 0x174   : > { %vm843_vm10 = vmand %vm810_vm15, %vm827_vm0  ;;  %v890_v29 = vsel %vm842_vm8, %v2022_v7, -inf  ;;  %v901_v52 = vmax.f32 %v885_v30, %v889_v33  ;;  %vm832_vm15 = vcmp.lt.s32.totalorder %v2098_v46, %v2750_v24  ;;  %vm816_vm1 = vcmp.ge.s32.totalorder %v2102_v47, %v2748_v23 }
 0x175   : > { %vm844_vm13 = vmand %vm811_vm2, %vm828_vm4  ;;  %v891_v53 = vsel %vm843_vm10, %v2029_v8, -inf  ;;  %v902_v54 = vmax.f32 %v886_v31, %v890_v29  ;;  %vm833_vm2 = vcmp.lt.s32.totalorder %v2102_v47, %v2750_v24  ;;  %vm834_vm5 = vcmp.lt.s32.totalorder %v2104_v48, %v2750_v24 }
 0x176   : > { %vm845_vm0 = vmand %vm812_vm3, %vm829_vm7  ;;  %v892_v55 = vsel %vm844_vm13, %v2032_v9, -inf  ;;  %v903_v56 = vmax.f32 %v887_v32, %v891_v53  ;;  %vm817_vm3 = vcmp.ge.s32.totalorder %v2104_v48, %v2748_v23  ;;  %vm835_vm8 = vcmp.lt.s32.totalorder %v2106_v49, %v2750_v24 }
 0x177   : > { %vm846_vm4 = vmand %vm813_vm6, %vm830_vm9  ;;  %v893_v51 = vsel %vm845_vm0, %v2035_v10, -inf  ;;  %v904_v57 = vmax.f32 %v888_v34, %v892_v55  ;;  %vm818_vm6 = vcmp.ge.s32.totalorder %v2106_v49, %v2748_v23  ;;  %vm819_vm10 = vcmp.ge.s32.totalorder %v2108_v50, %v2748_v23  ;;  %v922_v34 = vld [vmem:[#allocation2 + $0x4] sm:$0x1] }
 0x178   : > { %vm847_vm7 = vmand %vm814_vm11, %vm831_vm12  ;;  %v894_v59 = vsel %vm846_vm4, %v2042_v12, -inf  ;;  %v905_v60 = vmax.f32 %v901_v52, %v893_v51  ;;  %vm836_vm11 = vcmp.lt.s32.totalorder %v2108_v50, %v2750_v24 }
 0x179   : > { %vm848_vm9 = vmand %vm815_vm14, %vm832_vm15  ;;  %v895_v61 = vsel %vm847_vm7, %v2045_v13, -inf  ;;  %v906_v62 = vmax.f32 %v902_v54, %v894_v59 }
 0x17a   : > { %vm849_vm12 = vmand %vm816_vm1, %vm833_vm2  ;;  %v896_v63 = vsel %vm848_vm9, %v2048_v14, -inf  ;;  %v907_v58 = vmax.f32 %v903_v56, %v895_v61 }
 0x17b   : > { %vm850_vm13 = vmand %vm817_vm3, %vm834_vm5  ;;  %v897_v4 = vsel %vm849_vm12, %v2051_v15, -inf  ;;  %v908_v11 = vmax.f32 %v904_v57, %v896_v63 }
 0x17c   : > { %vm851_vm14 = vmand %vm818_vm6, %vm835_vm8  ;;  %v898_v19 = vsel %vm850_vm13, %v2054_v16, -inf  ;;  %v909_v20 = vmax.f32 %v905_v60, %v897_v4 }
 0x17d   : > { %vm852_vm15 = vmand %vm819_vm10, %vm836_vm11  ;;  %v899_v21 = vsel %vm851_vm14, %v2057_v17, -inf  ;;  %v910_v0 = vmax.f32 %v906_v62, %v898_v19 }
 0x17e   : > { %v900_v22 = vsel %vm852_vm15, %v2060_v18, -inf  ;;  %v911_v24 = vmax.f32 %v907_v58, %v899_v21 }
 0x17f   : > { %v912_v25 = vmax.f32 %v908_v11, %v900_v22  ;;  %v913_v26 = vmax.f32 %v909_v20, %v910_v0 }
 0x181   : > { %v914_v27 = vmax.f32 %v911_v24, %v912_v25 }
 0x183   : > { %v915_v28 = vmax.f32 %v913_v26, %v914_v27 }
 0x185   : > { %v916_v23 = vrot.slane %v915_v28, 4 }
 0x187   : > { %v917_v30 = vmax.f32 %v915_v28, %v916_v23 }
 0x189   : > { %v918_v31 = vrot.slane %v917_v30, 2 }
 0x18b   : > { %v919_v32 = vmax.f32 %v917_v30, %v918_v31 }
 0x18d   : > { %v920_v33 = vrot.slane %v919_v32, 1 }
 0x18f   : > { %v921_v29 = vmax.f32 %v919_v32, %v920_v33 }
 0x191   : > { %v923_v52 = vmax.f32 %v922_v34, %v921_v29 }
 0x193   : > { %924 = vst [vmem:[#allocation2 + $0x4] sm:$0x1] %v923_v52 }
 0x194 PF: > { %s925_s30 = sld [smem:[#allocation6 + %s793_s1]]  ;;  %s926_s9 = sadd.s32 6, %s2013_s26 }
 0x195   : > { %s927_s25 = sld [smem:[#allocation6 + %s926_s9]] }
 0x19a   : > { %p928_p10 = scmp.gt.s32.totalorder %s925_s30, %s2064_s19 }
 0x19b   : > { %p930_p2 = scmp.lt.s32.totalorder %s927_s25, %s2070_s20 }
 0x19c   : > { %s929_s27 = scalar_select %p928_p10, %s925_s30, %s2064_s19 }
 0x19d   : > { %s931_s24 = scalar_select %p930_p2, %s927_s25, %s2070_s20 }
 0x19f   : > { %p1448_p6 = scmp.ge.s32.totalorder %s929_s27, %s931_s24 }
 0x1a0   : > { %v2907_v53 = vstv (!%p1448_p6), %s925_s30  ;;  %v2909_v54 = vstv (!%p1448_p6), %s927_s25 }
 0x1a1   : > { %935 = sbr.rel (%p1448_p6) target bundleno = 456 (0x1c8), region = 60  ;;  %vm937_vm0 = vcmp.ge.s32.totalorder (!%p1448_p6), %v2072_v35, %v2907_v53  ;;  %vm938_vm1 = vcmp.ge.s32.totalorder (!%p1448_p6), %v2074_v36, %v2907_v53  ;;  %vm939_vm2 = vcmp.ge.s32.totalorder (!%p1448_p6), %v2076_v37, %v2907_v53  ;;  %vm954_vm4 = vcmp.lt.s32.totalorder (!%p1448_p6), %v2072_v35, %v2909_v54 }
 0x1a2   : > { %vm955_vm3 = vcmp.lt.s32.totalorder (!%p1448_p6), %v2074_v36, %v2909_v54  ;;  %vm956_vm5 = vcmp.lt.s32.totalorder (!%p1448_p6), %v2076_v37, %v2909_v54  ;;  %vm940_vm7 = vcmp.ge.s32.totalorder (!%p1448_p6), %v2078_v38, %v2907_v53  ;;  %vm957_vm6 = vcmp.lt.s32.totalorder (!%p1448_p6), %v2078_v38, %v2909_v54  ;;  %vm2927_vm8 = vmand (!%p1448_p6), %vm937_vm0, %vm954_vm4 }
 0x1a3   : > { %vm941_vm9 = vcmp.ge.s32.totalorder (!%p1448_p6), %v2082_v39, %v2907_v53  ;;  %vm958_vm10 = vcmp.lt.s32.totalorder (!%p1448_p6), %v2082_v39, %v2909_v54  ;;  %vm2935_vm11 = vmand (!%p1448_p6), %vm938_vm1, %vm955_vm3  ;;  %vm942_vm12 = vcmp.ge.s32.totalorder (!%p1448_p6), %v2084_v40, %v2907_v53  ;;  %vm959_vm13 = vcmp.lt.s32.totalorder (!%p1448_p6), %v2084_v40, %v2909_v54 }
 0x1a4   : > { %vm2943_vm14 = vmand (!%p1448_p6), %vm939_vm2, %vm956_vm5  ;;  %vm943_vm15 = vcmp.ge.s32.totalorder (!%p1448_p6), %v2086_v41, %v2907_v53  ;;  %vm960_vm0 = vcmp.lt.s32.totalorder (!%p1448_p6), %v2086_v41, %v2909_v54  ;;  %v1018_v59 = vsel (!%p1448_p6), %vm2927_vm8, %v2001_v1, -inf  ;;  %vm944_vm2 = vcmp.ge.s32.totalorder (!%p1448_p6), %v2088_v42, %v2907_v53 }
 0x1a5   : > { %vm2951_vm1 = vmand (!%p1448_p6), %vm940_vm7, %vm957_vm6  ;;  %vm945_vm4 = vcmp.ge.s32.totalorder (!%p1448_p6), %v2092_v43, %v2907_v53  ;;  %vm961_vm3 = vcmp.lt.s32.totalorder (!%p1448_p6), %v2088_v42, %v2909_v54  ;;  %v1019_v60 = vsel (!%p1448_p6), %vm2935_vm11, %v2004_v2, -inf  ;;  %vm946_vm7 = vcmp.ge.s32.totalorder (!%p1448_p6), %v2094_v44, %v2907_v53 }
 0x1a6   : > { %vm974_vm5 = vmand (!%p1448_p6), %vm941_vm9, %vm958_vm10  ;;  %vm962_vm6 = vcmp.lt.s32.totalorder (!%p1448_p6), %v2092_v43, %v2909_v54  ;;  %v1020_v61 = vsel (!%p1448_p6), %vm2943_vm14, %v2007_v3, -inf  ;;  %vm963_vm9 = vcmp.lt.s32.totalorder (!%p1448_p6), %v2094_v44, %v2909_v54  ;;  %v1021_v63 = vsel (!%p1448_p6), %vm2951_vm1, %v2016_v5, -inf }
 0x1a7   : > { %vm975_vm8 = vmand (!%p1448_p6), %vm942_vm12, %vm959_vm13  ;;  %v1022_v62 = vsel (!%p1448_p6), %vm974_vm5, %v2019_v6, -inf  ;;  %vm947_vm11 = vcmp.ge.s32.totalorder (!%p1448_p6), %v2096_v45, %v2907_v53  ;;  %vm964_vm12 = vcmp.lt.s32.totalorder (!%p1448_p6), %v2096_v45, %v2909_v54  ;;  %vm948_vm14 = vcmp.ge.s32.totalorder (!%p1448_p6), %v2098_v46, %v2907_v53 }
 0x1a8   : > { %vm976_vm10 = vmand %vm943_vm15, %vm960_vm0  ;;  %v1023_v58 = vsel %vm975_vm8, %v2022_v7, -inf  ;;  %v1034_v4 = vmax.f32 %v1018_v59, %v1022_v62  ;;  %vm965_vm15 = vcmp.lt.s32.totalorder %v2098_v46, %v2909_v54  ;;  %vm949_vm1 = vcmp.ge.s32.totalorder %v2102_v47, %v2907_v53 }
 0x1a9   : > { %vm977_vm13 = vmand %vm944_vm2, %vm961_vm3  ;;  %v1024_v11 = vsel %vm976_vm10, %v2029_v8, -inf  ;;  %v1035_v19 = vmax.f32 %v1019_v60, %v1023_v58  ;;  %vm966_vm2 = vcmp.lt.s32.totalorder %v2102_v47, %v2909_v54  ;;  %vm967_vm5 = vcmp.lt.s32.totalorder %v2104_v48, %v2909_v54 }
 0x1aa   : > { %vm978_vm0 = vmand %vm945_vm4, %vm962_vm6  ;;  %v1025_v20 = vsel %vm977_vm13, %v2032_v9, -inf  ;;  %v1036_v21 = vmax.f32 %v1020_v61, %v1024_v11  ;;  %vm950_vm4 = vcmp.ge.s32.totalorder %v2104_v48, %v2907_v53  ;;  %vm968_vm8 = vcmp.lt.s32.totalorder %v2106_v49, %v2909_v54 }
 0x1ab   : > { %vm979_vm3 = vmand %vm946_vm7, %vm963_vm9  ;;  %v1026_v0 = vsel %vm978_vm0, %v2035_v10, -inf  ;;  %v1037_v22 = vmax.f32 %v1021_v63, %v1025_v20  ;;  %vm951_vm7 = vcmp.ge.s32.totalorder %v2106_v49, %v2907_v53  ;;  %vm952_vm10 = vcmp.ge.s32.totalorder %v2108_v50, %v2907_v53  ;;  %v1055_v63 = vld [vmem:[#allocation2 + $0x5] sm:$0x1] }
 0x1ac   : > { %vm980_vm6 = vmand %vm947_vm11, %vm964_vm12  ;;  %v1027_v24 = vsel %vm979_vm3, %v2042_v12, -inf  ;;  %v1038_v25 = vmax.f32 %v1034_v4, %v1026_v0  ;;  %vm969_vm11 = vcmp.lt.s32.totalorder %v2108_v50, %v2909_v54 }
 0x1ad   : > { %vm981_vm9 = vmand %vm948_vm14, %vm965_vm15  ;;  %v1028_v26 = vsel %vm980_vm6, %v2045_v13, -inf  ;;  %v1039_v27 = vmax.f32 %v1035_v19, %v1027_v24 }
 0x1ae   : > { %vm982_vm12 = vmand %vm949_vm1, %vm966_vm2  ;;  %v1029_v28 = vsel %vm981_vm9, %v2048_v14, -inf  ;;  %v1040_v23 = vmax.f32 %v1036_v21, %v1028_v26 }
 0x1af   : > { %vm983_vm13 = vmand %vm950_vm4, %vm967_vm5  ;;  %v1030_v30 = vsel %vm982_vm12, %v2051_v15, -inf  ;;  %v1041_v31 = vmax.f32 %v1037_v22, %v1029_v28 }
 0x1b0   : > { %vm984_vm14 = vmand %vm951_vm7, %vm968_vm8  ;;  %v1031_v32 = vsel %vm983_vm13, %v2054_v16, -inf  ;;  %v1042_v33 = vmax.f32 %v1038_v25, %v1030_v30 }
 0x1b1   : > { %vm985_vm15 = vmand %vm952_vm10, %vm969_vm11  ;;  %v1032_v34 = vsel %vm984_vm14, %v2057_v17, -inf  ;;  %v1043_v29 = vmax.f32 %v1039_v27, %v1031_v32 }
 0x1b2   : > { %v1033_v52 = vsel %vm985_vm15, %v2060_v18, -inf  ;;  %v1044_v54 = vmax.f32 %v1040_v23, %v1032_v34 }
 0x1b3   : > { %v1045_v55 = vmax.f32 %v1041_v31, %v1033_v52  ;;  %v1046_v56 = vmax.f32 %v1042_v33, %v1043_v29 }
 0x1b5   : > { %v1047_v51 = vmax.f32 %v1044_v54, %v1045_v55 }
 0x1b7   : > { %v1048_v57 = vmax.f32 %v1046_v56, %v1047_v51 }
 0x1b9   : > { %v1049_v53 = vrot.slane %v1048_v57, 4 }
 0x1bb   : > { %v1050_v59 = vmax.f32 %v1048_v57, %v1049_v53 }
 0x1bd   : > { %v1051_v60 = vrot.slane %v1050_v59, 2 }
 0x1bf   : > { %v1052_v61 = vmax.f32 %v1050_v59, %v1051_v60 }
 0x1c1   : > { %v1053_v62 = vrot.slane %v1052_v61, 1 }
 0x1c3   : > { %v1054_v58 = vmax.f32 %v1052_v61, %v1053_v62 }
 0x1c5   : > { %v1056_v4 = vmax.f32 %v1055_v63, %v1054_v58 }
 0x1c7   : > { %1057 = vst [vmem:[#allocation2 + $0x5] sm:$0x1] %v1056_v4 }
 0x1c8 PF: > { %s1058_s18 = sld [smem:[#allocation6 + %s926_s9]]  ;;  %s1059_s6 = sadd.s32 7, %s2013_s26 }
 0x1c9   : > { %s1060_s15 = sld [smem:[#allocation6 + %s1059_s6]] }
 0x1ce   : > { %p1061_p11 = scmp.gt.s32.totalorder %s1058_s18, %s2064_s19 }
 0x1cf   : > { %p1063_p13 = scmp.lt.s32.totalorder %s1060_s15, %s2070_s20 }
 0x1d0   : > { %s1062_s1 = scalar_select %p1061_p11, %s1058_s18, %s2064_s19 }
 0x1d1   : > { %s1064_s23 = scalar_select %p1063_p13, %s1060_s15, %s2070_s20 }
 0x1d3   : > { %p1449_p0 = scmp.ge.s32.totalorder %s1062_s1, %s1064_s23 }
 0x1d4   : > { %v3066_v11 = vstv (!%p1449_p0), %s1058_s18  ;;  %v3068_v19 = vstv (!%p1449_p0), %s1060_s15 }
 0x1d5   : > { %1068 = sbr.rel (%p1449_p0) target bundleno = 508 (0x1fc), region = 64  ;;  %vm1070_vm0 = vcmp.ge.s32.totalorder (!%p1449_p0), %v2072_v35, %v3066_v11  ;;  %vm1071_vm1 = vcmp.ge.s32.totalorder (!%p1449_p0), %v2074_v36, %v3066_v11  ;;  %vm1072_vm2 = vcmp.ge.s32.totalorder (!%p1449_p0), %v2076_v37, %v3066_v11  ;;  %vm1087_vm3 = vcmp.lt.s32.totalorder (!%p1449_p0), %v2072_v35, %v3068_v19 }
 0x1d6   : > { %vm1088_vm4 = vcmp.lt.s32.totalorder (!%p1449_p0), %v2074_v36, %v3068_v19  ;;  %vm1089_vm5 = vcmp.lt.s32.totalorder (!%p1449_p0), %v2076_v37, %v3068_v19  ;;  %vm1073_vm6 = vcmp.ge.s32.totalorder (!%p1449_p0), %v2078_v38, %v3066_v11  ;;  %vm1090_vm7 = vcmp.lt.s32.totalorder (!%p1449_p0), %v2078_v38, %v3068_v19  ;;  %vm3086_vm8 = vmand (!%p1449_p0), %vm1070_vm0, %vm1087_vm3 }
 0x1d7   : > { %vm1074_vm9 = vcmp.ge.s32.totalorder (!%p1449_p0), %v2082_v39, %v3066_v11  ;;  %vm1091_vm10 = vcmp.lt.s32.totalorder (!%p1449_p0), %v2082_v39, %v3068_v19  ;;  %vm3094_vm11 = vmand (!%p1449_p0), %vm1071_vm1, %vm1088_vm4  ;;  %vm1075_vm12 = vcmp.ge.s32.totalorder (!%p1449_p0), %v2084_v40, %v3066_v11  ;;  %vm1092_vm13 = vcmp.lt.s32.totalorder (!%p1449_p0), %v2084_v40, %v3068_v19 }
 0x1d8   : > { %vm3102_vm14 = vmand (!%p1449_p0), %vm1072_vm2, %vm1089_vm5  ;;  %vm1076_vm15 = vcmp.ge.s32.totalorder (!%p1449_p0), %v2086_v41, %v3066_v11  ;;  %vm1093_vm0 = vcmp.lt.s32.totalorder (!%p1449_p0), %v2086_v41, %v3068_v19  ;;  %v1151_v24 = vsel (!%p1449_p0), %vm3086_vm8, %v2001_v1, -inf  ;;  %vm1077_vm2 = vcmp.ge.s32.totalorder (!%p1449_p0), %v2088_v42, %v3066_v11 }
 0x1d9   : > { %vm3110_vm1 = vmand (!%p1449_p0), %vm1073_vm6, %vm1090_vm7  ;;  %vm1078_vm3 = vcmp.ge.s32.totalorder (!%p1449_p0), %v2092_v43, %v3066_v11  ;;  %vm1094_vm4 = vcmp.lt.s32.totalorder (!%p1449_p0), %v2088_v42, %v3068_v19  ;;  %v1152_v25 = vsel (!%p1449_p0), %vm3094_vm11, %v2004_v2, -inf  ;;  %vm1079_vm6 = vcmp.ge.s32.totalorder (!%p1449_p0), %v2094_v44, %v3066_v11 }
 0x1da   : > { %vm1107_vm5 = vmand (!%p1449_p0), %vm1074_vm9, %vm1091_vm10  ;;  %vm1095_vm7 = vcmp.lt.s32.totalorder (!%p1449_p0), %v2092_v43, %v3068_v19  ;;  %v1153_v26 = vsel (!%p1449_p0), %vm3102_vm14, %v2007_v3, -inf  ;;  %vm1096_vm9 = vcmp.lt.s32.totalorder (!%p1449_p0), %v2094_v44, %v3068_v19  ;;  %v1154_v28 = vsel (!%p1449_p0), %vm3110_vm1, %v2016_v5, -inf }
 0x1db   : > { %vm1108_vm8 = vmand (!%p1449_p0), %vm1075_vm12, %vm1092_vm13  ;;  %v1155_v27 = vsel (!%p1449_p0), %vm1107_vm5, %v2019_v6, -inf  ;;  %vm1080_vm11 = vcmp.ge.s32.totalorder (!%p1449_p0), %v2096_v45, %v3066_v11  ;;  %vm1097_vm12 = vcmp.lt.s32.totalorder (!%p1449_p0), %v2096_v45, %v3068_v19  ;;  %vm1081_vm14 = vcmp.ge.s32.totalorder (!%p1449_p0), %v2098_v46, %v3066_v11 }
 0x1dc   : > { %vm1109_vm10 = vmand %vm1076_vm15, %vm1093_vm0  ;;  %v1156_v23 = vsel %vm1108_vm8, %v2022_v7, -inf  ;;  %v1167_v30 = vmax.f32 %v1151_v24, %v1155_v27  ;;  %vm1098_vm15 = vcmp.lt.s32.totalorder %v2098_v46, %v3068_v19  ;;  %vm1082_vm1 = vcmp.ge.s32.totalorder %v2102_v47, %v3066_v11 }
 0x1dd   : > { %vm1110_vm13 = vmand %vm1077_vm2, %vm1094_vm4  ;;  %v1157_v31 = vsel %vm1109_vm10, %v2029_v8, -inf  ;;  %v1168_v32 = vmax.f32 %v1152_v25, %v1156_v23  ;;  %vm1099_vm2 = vcmp.lt.s32.totalorder %v2102_v47, %v3068_v19  ;;  %vm1100_vm5 = vcmp.lt.s32.totalorder %v2104_v48, %v3068_v19 }
 0x1de   : > { %vm1111_vm0 = vmand %vm1078_vm3, %vm1095_vm7  ;;  %v1158_v33 = vsel %vm1110_vm13, %v2032_v9, -inf  ;;  %v1169_v34 = vmax.f32 %v1153_v26, %v1157_v31  ;;  %vm1083_vm3 = vcmp.ge.s32.totalorder %v2104_v48, %v3066_v11  ;;  %vm1101_vm8 = vcmp.lt.s32.totalorder %v2106_v49, %v3068_v19 }
 0x1df   : > { %vm1112_vm4 = vmand %vm1079_vm6, %vm1096_vm9  ;;  %v1159_v29 = vsel %vm1111_vm0, %v2035_v10, -inf  ;;  %v1170_v52 = vmax.f32 %v1154_v28, %v1158_v33  ;;  %vm1084_vm6 = vcmp.ge.s32.totalorder %v2106_v49, %v3066_v11  ;;  %vm1085_vm10 = vcmp.ge.s32.totalorder %v2108_v50, %v3066_v11  ;;  %v1188_v28 = vld [vmem:[#allocation2 + $0x6] sm:$0x1] }
 0x1e0   : > { %vm1113_vm7 = vmand %vm1080_vm11, %vm1097_vm12  ;;  %v1160_v54 = vsel %vm1112_vm4, %v2042_v12, -inf  ;;  %v1171_v55 = vmax.f32 %v1167_v30, %v1159_v29  ;;  %vm1102_vm11 = vcmp.lt.s32.totalorder %v2108_v50, %v3068_v19 }
 0x1e1   : > { %vm1114_vm9 = vmand %vm1081_vm14, %vm1098_vm15  ;;  %v1161_v56 = vsel %vm1113_vm7, %v2045_v13, -inf  ;;  %v1172_v51 = vmax.f32 %v1168_v32, %v1160_v54 }
 0x1e2   : > { %vm1115_vm12 = vmand %vm1082_vm1, %vm1099_vm2  ;;  %v1162_v57 = vsel %vm1114_vm9, %v2048_v14, -inf  ;;  %v1173_v53 = vmax.f32 %v1169_v34, %v1161_v56 }
 0x1e3   : > { %vm1116_vm13 = vmand %vm1083_vm3, %vm1100_vm5  ;;  %v1163_v59 = vsel %vm1115_vm12, %v2051_v15, -inf  ;;  %v1174_v60 = vmax.f32 %v1170_v52, %v1162_v57 }
 0x1e4   : > { %vm1117_vm14 = vmand %vm1084_vm6, %vm1101_vm8  ;;  %v1164_v61 = vsel %vm1116_vm13, %v2054_v16, -inf  ;;  %v1175_v62 = vmax.f32 %v1171_v55, %v1163_v59 }
 0x1e5   : > { %vm1118_vm15 = vmand %vm1085_vm10, %vm1102_vm11  ;;  %v1165_v63 = vsel %vm1117_vm14, %v2057_v17, -inf  ;;  %v1176_v58 = vmax.f32 %v1172_v51, %v1164_v61 }
 0x1e6   : > { %v1166_v4 = vsel %vm1118_vm15, %v2060_v18, -inf  ;;  %v1177_v19 = vmax.f32 %v1173_v53, %v1165_v63 }
 0x1e7   : > { %v1178_v20 = vmax.f32 %v1174_v60, %v1166_v4  ;;  %v1179_v21 = vmax.f32 %v1175_v62, %v1176_v58 }
 0x1e9   : > { %v1180_v0 = vmax.f32 %v1177_v19, %v1178_v20 }
 0x1eb   : > { %v1181_v22 = vmax.f32 %v1179_v21, %v1180_v0 }
 0x1ed   : > { %v1182_v11 = vrot.slane %v1181_v22, 4 }
 0x1ef   : > { %v1183_v24 = vmax.f32 %v1181_v22, %v1182_v11 }
 0x1f1   : > { %v1184_v25 = vrot.slane %v1183_v24, 2 }
 0x1f3   : > { %v1185_v26 = vmax.f32 %v1183_v24, %v1184_v25 }
 0x1f5   : > { %v1186_v27 = vrot.slane %v1185_v26, 1 }
 0x1f7   : > { %v1187_v23 = vmax.f32 %v1185_v26, %v1186_v27 }
 0x1f9   : > { %v1189_v30 = vmax.f32 %v1188_v28, %v1187_v23 }
 0x1fb   : > { %1190 = vst [vmem:[#allocation2 + $0x6] sm:$0x1] %v1189_v30 }
 0x1fc PF: > { %s1191_s22 = sld [smem:[#allocation6 + %s1059_s6]]  ;;  %s1192_s21 = sadd.s32 8, %s2013_s26 }
 0x1fd   : > { %s1193_s30 = sld [smem:[#allocation6 + %s1192_s21]] }
 0x202   : > { %p1194_p3 = scmp.gt.s32.totalorder %s1191_s22, %s2064_s19 }
 0x203   : > { %p1196_p7 = scmp.lt.s32.totalorder %s1193_s30, %s2070_s20 }
 0x204   : > { %s1195_s9 = scalar_select %p1194_p3, %s1191_s22, %s2064_s19 }
 0x205   : > { %s1197_s25 = scalar_select %p1196_p7, %s1193_s30, %s2070_s20 }
 0x207   : > { %p1450_p8 = scmp.ge.s32.totalorder %s1195_s9, %s1197_s25 }
 0x208   : > { %v3223_v31 = vstv (!%p1450_p8), %s1191_s22  ;;  %v3225_v32 = vstv (!%p1450_p8), %s1193_s30  ;;  %v1321_v60 = vld [vmem:[#allocation2 + $0x7] sm:$0x1] (!%p1450_p8) }
 0x209   : > { %1201 = sbr.rel (%p1450_p8) target bundleno = 560 (0x230), region = 68  ;;  %vm1203_vm0 = vcmp.ge.s32.totalorder (!%p1450_p8), %v2072_v35, %v3223_v31  ;;  %vm1204_vm1 = vcmp.ge.s32.totalorder (!%p1450_p8), %v2074_v36, %v3223_v31  ;;  %vm1205_vm2 = vcmp.ge.s32.totalorder (!%p1450_p8), %v2076_v37, %v3223_v31  ;;  %vm1220_vm4 = vcmp.lt.s32.totalorder (!%p1450_p8), %v2072_v35, %v3225_v32 }
 0x20a   : > { %vm1221_vm3 = vcmp.lt.s32.totalorder (!%p1450_p8), %v2074_v36, %v3225_v32  ;;  %vm1222_vm5 = vcmp.lt.s32.totalorder (!%p1450_p8), %v2076_v37, %v3225_v32  ;;  %vm1206_vm7 = vcmp.ge.s32.totalorder (!%p1450_p8), %v2078_v38, %v3223_v31  ;;  %vm1223_vm6 = vcmp.lt.s32.totalorder (!%p1450_p8), %v2078_v38, %v3225_v32  ;;  %vm3243_vm8 = vmand (!%p1450_p8), %vm1203_vm0, %vm1220_vm4 }
 0x20b   : > { %vm1207_vm9 = vcmp.ge.s32.totalorder (!%p1450_p8), %v2082_v39, %v3223_v31  ;;  %vm1224_vm10 = vcmp.lt.s32.totalorder (!%p1450_p8), %v2082_v39, %v3225_v32  ;;  %vm3251_vm11 = vmand (!%p1450_p8), %vm1204_vm1, %vm1221_vm3  ;;  %vm1208_vm12 = vcmp.ge.s32.totalorder (!%p1450_p8), %v2084_v40, %v3223_v31  ;;  %vm1225_vm13 = vcmp.lt.s32.totalorder (!%p1450_p8), %v2084_v40, %v3225_v32 }
 0x20c   : > { %vm3259_vm14 = vmand (!%p1450_p8), %vm1205_vm2, %vm1222_vm5  ;;  %vm1209_vm15 = vcmp.ge.s32.totalorder (!%p1450_p8), %v2086_v41, %v3223_v31  ;;  %vm1226_vm0 = vcmp.lt.s32.totalorder (!%p1450_p8), %v2086_v41, %v3225_v32  ;;  %v1284_v38 = vsel (!%p1450_p8), %vm3243_vm8, %v2001_v1, -inf  ;;  %vm1210_vm2 = vcmp.ge.s32.totalorder (!%p1450_p8), %v2088_v42, %v3223_v31 }
 0x20d   : > { %vm3267_vm1 = vmand (!%p1450_p8), %vm1206_vm7, %vm1223_vm6  ;;  %vm1211_vm4 = vcmp.ge.s32.totalorder (!%p1450_p8), %v2092_v43, %v3223_v31  ;;  %vm1227_vm3 = vcmp.lt.s32.totalorder (!%p1450_p8), %v2088_v42, %v3225_v32  ;;  %v1285_v39 = vsel (!%p1450_p8), %vm3251_vm11, %v2004_v2, -inf  ;;  %vm1212_vm7 = vcmp.ge.s32.totalorder (!%p1450_p8), %v2094_v44, %v3223_v31 }
 0x20e   : > { %vm1240_vm5 = vmand (!%p1450_p8), %vm1207_vm9, %vm1224_vm10  ;;  %vm1228_vm6 = vcmp.lt.s32.totalorder (!%p1450_p8), %v2092_v43, %v3225_v32  ;;  %v1286_v1 = vsel (!%p1450_p8), %vm3259_vm14, %v2007_v3, -inf  ;;  %vm1229_vm9 = vcmp.lt.s32.totalorder (!%p1450_p8), %v2094_v44, %v3225_v32  ;;  %v1287_v2 = vsel (!%p1450_p8), %vm3267_vm1, %v2016_v5, -inf }
 0x20f   : > { %vm1241_vm8 = vmand (!%p1450_p8), %vm1208_vm12, %vm1225_vm13  ;;  %v1288_v40 = vsel (!%p1450_p8), %vm1240_vm5, %v2019_v6, -inf  ;;  %vm1213_vm11 = vcmp.ge.s32.totalorder (!%p1450_p8), %v2096_v45, %v3223_v31  ;;  %vm1230_vm12 = vcmp.lt.s32.totalorder (!%p1450_p8), %v2096_v45, %v3225_v32  ;;  %vm1214_vm14 = vcmp.ge.s32.totalorder (!%p1450_p8), %v2098_v46, %v3223_v31 }
 0x210   : > { %vm1242_vm10 = vmand %vm1209_vm15, %vm1226_vm0  ;;  %v1289_v34 = vsel %vm1241_vm8, %v2022_v7, -inf  ;;  %v1300_v29 = vmax.f32 %v1284_v38, %v1288_v40  ;;  %vm1231_vm15 = vcmp.lt.s32.totalorder %v2098_v46, %v3225_v32  ;;  %vm1215_vm1 = vcmp.ge.s32.totalorder %v2102_v47, %v3223_v31 }
 0x211   : > { %vm1243_vm13 = vmand %vm1210_vm2, %vm1227_vm3  ;;  %v1290_v3 = vsel %vm1242_vm10, %v2029_v8, -inf  ;;  %v1301_v6 = vmax.f32 %v1285_v39, %v1289_v34  ;;  %vm1232_vm2 = vcmp.lt.s32.totalorder %v2102_v47, %v3225_v32  ;;  %vm1233_vm5 = vcmp.lt.s32.totalorder %v2104_v48, %v3225_v32 }
 0x212   : > { %vm1244_vm0 = vmand %vm1211_vm4, %vm1228_vm6  ;;  %v1291_v5 = vsel %vm1243_vm13, %v2032_v9, -inf  ;;  %v1302_v7 = vmax.f32 %v1286_v1, %v1290_v3  ;;  %vm1216_vm4 = vcmp.ge.s32.totalorder %v2104_v48, %v3223_v31  ;;  %vm1234_vm8 = vcmp.lt.s32.totalorder %v2106_v49, %v3225_v32 }
 0x213   : > { %vm1245_vm3 = vmand %vm1212_vm7, %vm1229_vm9  ;;  %v1292_v8 = vsel %vm1244_vm0, %v2035_v10, -inf  ;;  %v1303_v41 = vmax.f32 %v1287_v2, %v1291_v5  ;;  %vm1217_vm7 = vcmp.ge.s32.totalorder %v2106_v49, %v3223_v31  ;;  %vm1218_vm10 = vcmp.ge.s32.totalorder %v2108_v50, %v3223_v31 }
 0x214   : > { %vm1246_vm6 = vmand %vm1213_vm11, %vm1230_vm12  ;;  %v1293_v9 = vsel %vm1245_vm3, %v2042_v12, -inf  ;;  %v1304_v42 = vmax.f32 %v1300_v29, %v1292_v8  ;;  %vm1235_vm11 = vcmp.lt.s32.totalorder %v2108_v50, %v3225_v32 }
 0x215   : > { %vm1247_vm9 = vmand %vm1214_vm14, %vm1231_vm15  ;;  %v1294_v10 = vsel %vm1246_vm6, %v2045_v13, -inf  ;;  %v1305_v43 = vmax.f32 %v1301_v6, %v1293_v9 }
 0x216   : > { %vm1248_vm12 = vmand %vm1215_vm1, %vm1232_vm2  ;;  %v1295_v12 = vsel %vm1247_vm9, %v2048_v14, -inf  ;;  %v1306_v44 = vmax.f32 %v1302_v7, %v1294_v10 }
 0x217   : > { %vm1249_vm13 = vmand %vm1216_vm4, %vm1233_vm5  ;;  %v1296_v13 = vsel %vm1248_vm12, %v2051_v15, -inf  ;;  %v1307_v45 = vmax.f32 %v1303_v41, %v1295_v12 }
 0x218   : > { %vm1250_vm14 = vmand %vm1217_vm7, %vm1234_vm8  ;;  %v1297_v46 = vsel %vm1249_vm13, %v2054_v16, -inf  ;;  %v1308_v49 = vmax.f32 %v1304_v42, %v1296_v13 }
 0x219   : > { %vm1251_vm15 = vmand %vm1218_vm10, %vm1235_vm11  ;;  %v1298_v50 = vsel %vm1250_vm14, %v2057_v17, -inf  ;;  %v1309_v52 = vmax.f32 %v1305_v43, %v1297_v46 }
 0x21a   : > { %v1299_v47 = vsel %vm1251_vm15, %v2060_v18, -inf  ;;  %v1310_v54 = vmax.f32 %v1306_v44, %v1298_v50 }
 0x21b   : > { %v1311_v14 = vmax.f32 %v1307_v45, %v1299_v47  ;;  %v1312_v55 = vmax.f32 %v1308_v49, %v1309_v52 }
 0x21d   : > { %v1313_v56 = vmax.f32 %v1310_v54, %v1311_v14 }
 0x21f   : > { %v1314_v51 = vmax.f32 %v1312_v55, %v1313_v56 }
 0x221   : > { %v1315_v48 = vrot.slane %v1314_v51, 4 }
 0x223   : > { %v1316_v57 = vmax.f32 %v1314_v51, %v1315_v48 }
 0x225   : > { %v1317_v53 = vrot.slane %v1316_v57, 2 }
 0x227   : > { %v1318_v15 = vmax.f32 %v1316_v57, %v1317_v53 }
 0x229   : > { %v1319_v59 = vrot.slane %v1318_v15, 1 }
 0x22b   : > { %v1320_v61 = vmax.f32 %v1318_v15, %v1319_v59 }
 0x22d   : > { %v1322_v16 = vmax.f32 %v1321_v60, %v1320_v61 }
 0x22f   : > { %1323 = vst [vmem:[#allocation2 + $0x7] sm:$0x1] %v1322_v16 }
 0x230 PF: > { %p1451_p9 = scmp.ne.s32.totalorder %s1745_s12, 2 }
 0x232   : > { %1327 = sbr.rel (%p1451_p9) target bundleno = 569 (0x239), region = 72 }
 0x236   : > { %v1328_v17 = vld [vmem:[#allocation2] sm:$0xff] (!%p1451_p9) }
 0x237   : > { %1329 = vst [vmem:[%s185_s29] sm:$0xff] (!%p1451_p9), %v1328_v17 }
 0x239 PF: > { %s1453_s26 = sshll.u32 %s1749_s13, 7  ;;  %s1344_s24 = sshll.u32 %s185_s29, 4  ;;  %s1345_s24 = int_to_ptr.vmem [resolvable:$true] %s1344_s24 }
 0x23a   : > { %s3380_s27 = scalar_lea.hbm %s3442_s4, %s1453_s26  ;;  %s1331_s12 = scalar_lea.sflag [#allocation9], %s183_s17 }
 0x23b   : > { %s1637_s18 = scalar_lea.vmem %s1345_s24, 128  ;;  %p3527_p12 = scmp.ne.s32.totalorder %s3456_s5, 0 }
 0x23c   : > { %p1638_p4 = scmp.ne.s32.totalorder %s1345_s24, %s1637_s18  ;;  %s1770_s6 = smov [#allocation10]  }
 0x23d   : > { %s1641_s15 = sshll.u32 %s1770_s6, 4  ;;  %s1642_s15 = int_to_ptr.vmem [resolvable:$false] %s1641_s15 }
 0x23e   : > { %p1639_p1 = pnand %p1638_p4, %p3527_p12  ;;  %s1643_s1 = scalar_lea.vmem %s1642_s15, 256 }
 0x23f   : > { %p1644_p10 = scmp.lt.s32.totalorder %s1345_s24, %s1642_s15  ;;  %p1645_p2 = scmp.lt.s32.totalorder %s1643_s1, %s1637_s18 }
 0x240   : > { %p1640_p5 = pneg %p1639_p1 }
 0x241   : > { %p1646_p6 = por %p1645_p2, %p1644_p10 }
 0x243   : > { %p1647_p11 = pnand %p1646_p6, %p1640_p5 }
 0x245   : > { %1650 = shalt.err (!%p1647_p11)
}
 0x246   : > { %s1651_s13 = scalar_lea.hbm %s3380_s27, 128  ;;  %s1655_s29 = scalar_lea.hbm %s3442_s4, 256 }
 0x247   : > { %p1652_p13 = scmp.ne.s32.totalorder %s3380_s27, %s1651_s13  ;;  %p1656_p7 = scmp.lt.u32.totalorder %s3380_s27, %s3442_s4 }
 0x248   : > { %p1657_p8 = scmp.lt.u32.totalorder %s1655_s29, %s1651_s13  ;;  %p1659_p4 = scmp.lt.u32.totalorder %s1651_s13, %s3380_s27 }
 0x249   : > { %p1653_p0 = pnand %p1652_p13, %p3527_p12 }
 0x24a   : > { %p1658_p9 = por %p1657_p8, %p1656_p7 }
 0x24b   : > { %p1654_p3 = pneg %p1653_p0 }
 0x24c   : > { %p1660_p1 = por %p1659_p4, %p1658_p9 }
 0x24e   : > { %p1661_p5 = pnand %p1660_p1, %p1654_p3 }
 0x250   : > { %1664 = shalt.err (!%p1661_p5)
}
 0x251   : > { %1463 = dma.vmem_to_hbm [thread:$0]  (%p3527_p12), %s1345_s24, 128, %s3380_s27, %s1331_s12  }
 0x252 PF: > { %p1478_p10 = scmp.ge.s32.totalorder %s1761_s16, 2  ;;  %s1356_s21 = sand.u32 1, %s1721_s2  }
 0x253   : > { %p3528_p2 = scmp.ne.s32.totalorder %s3457_s0, 0  ;;  %s1357_s30 = scalar_lea.sflag [#allocation9], %s1356_s21 }
 0x255   : > { %p1474_p6 = pnand %p1478_p10, %p3528_p2 }
 0x257   : > { %1716 = dma.done.wait (!%p1474_p6), %s1357_s30, 128  }
 0x258   : > { %1718 = vsyncadd (!%p1474_p6), %s1357_s30, 4294967168  ;;  %s32_s16 = sadd.s32 1, %s1761_s16   ;;  %s3529_s5 = sld [smem:[#allocation18_spill]] }
 0x259   : > { %p29_p11 = scmp.ge.s32.totalorder %s32_s16, 8   ;;  %s3530_s11 = sld [smem:[#allocation22_spill]] }
 0x25a   : > { %s3531_s13 = sld [smem:[#allocation19_spill]]  ;;  %s3532_s25 = sld [smem:[#allocation20_spill]] }
 0x25b   : > { %s3533_s15 = sld [smem:[#allocation21_spill]]  ;;  %s3534_s2 = smov %s1725_s7 }
 0x25c   : > { %s3535_s7 = smov %s1729_s8  ;;  %s3536_s8 = smov %s1895_s28 }
 0x25d   : > { %s3537_s9 = smov %s1737_s10  ;;  %s3539_s12 = smov %s1753_s14 }
 0x25e   : > { %s3538_s10 = smov %s3529_s5  ;;  %31 = sbr.rel (!%p29_p11) target bundleno = 42 (0x2a), region = 113 }
 0x260   : > { %s3540_s14 = smov %s3532_s25 }
 0x265   :  { %1362 = vsyncpa [#allocation8], 1 }
 0x266   :  { %1364 = vsyncpa [#allocation8 + $0x1], 1 }
 0x267   :  { %1365 = vsyncpa [#allocation9], 1 }
 0x268   :  { %1367 = vsyncpa [#allocation9 + $0x1], 1 }

</bundles_post_ra>
